<compile_context>
chip_gen: v6e
topology: v6e:2x2x1
jax: 0.10.0
libtpu: 0.0.40
codegen_flags: <defaults>
</compile_context>

<pallas_src>
import functools

import jax
import jax.numpy as jnp
from jax import lax
from jax.experimental import pallas as pl
from jax.experimental.pallas import tpu as pltpu


def _rowsum_vpu(h):
    """Partial row-sum of (R, F): fold rows into 8 sublanes with VPU adds."""
    r, f = h.shape
    if r % 8 == 0 and r > 8:
        # (R, F) -> (R//8, 8, F): each (8, F) group is exactly a set of f32
        # vreg rows, so the axis-0 sum is plain vreg+vreg VALU adds (no MXU
        # weight pushes, no per-tile XLU work).
        return jnp.sum(h.reshape(r // 8, 8, f), axis=0)
    return h


def _backbone_single_kernel(x_ref, wbb_ref, bbias_ref, feat_ref, *, inv_hw):
    # Small-problem path: one spatial block per batch, no scratch, no pl.when.
    h = jnp.dot(x_ref[...], wbb_ref[...], preferred_element_type=jnp.float32)
    h = jnp.maximum(h + bbias_ref[...], 0.0)            # (HW, F_pad), lane-dense
    part = _rowsum_vpu(h)
    feat_ref[...] = jnp.sum(part, axis=0, keepdims=True) * inv_hw


def _backbone_multi_kernel(x_ref, wbb_ref, bbias_ref, feat_ref, acc_ref, *, inv_hw):
    # NOTE: this accumulator pattern requires the spatial axis to stay the
    # innermost grid axis with "arbitrary" (sequential) semantics. Do not make
    # it parallel / split it across cores without adding a combine step.
    k = pl.program_id(1)

    @pl.when(k == 0)
    def _():
        acc_ref[...] = jnp.zeros_like(acc_ref)

    h = jnp.dot(x_ref[...], wbb_ref[...], preferred_element_type=jnp.float32)
    h = jnp.maximum(h + bbias_ref[...], 0.0)             # (tile_hw, F_pad)
    acc_ref[...] += _rowsum_vpu(h)                        # (8, F_pad), VPU adds

    @pl.when(k == pl.num_programs(1) - 1)
    def _():
        # Single per-batch 8-sublane reduce + fold of the 1/HW averaging.
        feat_ref[...] = jnp.sum(acc_ref[...], axis=0, keepdims=True) * inv_hw


def _heads_kernel(feat_ref, wreg_ref, wcls_ref, wcls3_ref, hbias_ref, out_ref,
                  *, f_pad):
    F = f_pad
    feat = feat_ref[...]                                  # (B, F_pad) f32

    # regressor: F_pad -> 128 -> 64 -> 32 -> 4 (lane-padded to 128), sigmoid
    r = jnp.maximum(
        jnp.dot(feat, wreg_ref[0:F, :], preferred_element_type=jnp.float32)
        + hbias_ref[0:1, 0:128], 0.0)
    r = jnp.maximum(
        jnp.dot(r, wreg_ref[F:F + 128, 0:64], preferred_element_type=jnp.float32)
        + hbias_ref[1:2, 0:64], 0.0)
    r = jnp.maximum(
        jnp.dot(r, wreg_ref[F + 128:F + 192, 0:32],
                preferred_element_type=jnp.float32)
        + hbias_ref[2:3, 0:32], 0.0)
    r = (jnp.dot(r, wreg_ref[F + 192:F + 224, :],
                 preferred_element_type=jnp.float32)
         + hbias_ref[3:4, 0:128])                         # (B,128), bbox lanes 0:4

    # classifier: F_pad -> 512 -> 512 -> num_labels (lane-padded to 128).
    # Dropout is identity at inference time.
    c = jnp.maximum(
        jnp.dot(feat, wcls_ref[0:F, :], preferred_element_type=jnp.float32)
        + hbias_ref[4:5, :], 0.0)
    c = jnp.maximum(
        jnp.dot(c, wcls_ref[F:F + 512, :], preferred_element_type=jnp.float32)
        + hbias_ref[5:6, :], 0.0)
    c = (jnp.dot(c, wcls3_ref[...], preferred_element_type=jnp.float32)
         + hbias_ref[6:7, 0:128])                         # (B,128), logits lanes 4:4+L

    # pack: sigmoid on bbox lanes only, single lane-dense 128-wide store.
    lane = lax.broadcasted_iota(jnp.int32, out_ref.shape, 1)
    out_ref[...] = jnp.where(lane < 4, jax.nn.sigmoid(r), c)


def _pick_tile_hw(hw, c, f_pad, x_itemsize, budget_bytes=24 * 1024 * 1024):
    """Largest spatial tile fitting a VMEM budget; prefer one block per batch."""
    # per-row VMEM cost: double-buffered (lane-padded) x tile row + f32 h temp.
    row_bytes = 2 * max(c, 128) * x_itemsize + f_pad * 4
    if hw * row_bytes <= budget_bytes:
        return hw                       # small-problem path: collapse the k axis
    cand = 1 << 14
    while cand >= 8:
        if hw % cand == 0 and cand * row_bytes <= budget_bytes:
            return cand
        cand //= 2
    return hw                           # fallback: single oversized block


def bbox_detection_forward(x_nchw, packed, num_labels, *, tile_hw=None,
                           compute_dtype=jnp.bfloat16):
    """x_nchw: (B, C, H, W). Returns (bboxes (B, 4), logits (B, num_labels))."""
    B, C, H, W = x_nchw.shape
    HW = H * W
    wbb, bbias, wreg, wcls, wcls3, hbias = packed
    F_pad = wbb.shape[1]
    assert F_pad % 128 == 0

    # NCHW -> (B, HW, C) + low-precision cast: one fused XLA pass over x.
    x = jnp.transpose(x_nchw.reshape(B, C, HW), (0, 2, 1)).astype(compute_dtype)
    wbb = wbb.astype(compute_dtype)

    if tile_hw is None:
        tile_hw = _pick_tile_hw(HW, C, F_pad, jnp.dtype(compute_dtype).itemsize)
    assert HW % tile_hw == 0
    k_steps = HW // tile_hw
    if k_steps > 1:
        assert tile_hw % 8 == 0

    inv_hw = 1.0 / float(HW)
    x_bytes = B * HW * C * jnp.dtype(compute_dtype).itemsize
    cost_a = pl.CostEstimate(
        flops=2 * B * HW * C * F_pad + 2 * B * HW * F_pad,
        transcendentals=0,
        bytes_accessed=(x_bytes + wbb.size * wbb.dtype.itemsize
                        + bbias.size * 4 + B * F_pad * 4))

    in_specs = [
        pl.BlockSpec((None, tile_hw, C), lambda b, k: (b, k, 0)),
        # grid-invariant weights (constant index_map -> DMA'd once).
        pl.BlockSpec((C, F_pad), lambda b, k: (0, 0)),
        pl.BlockSpec((1, F_pad), lambda b, k: (0, 0)),
    ]
    out_spec = pl.BlockSpec((None, 1, F_pad), lambda b, k: (b, 0, 0))

    if k_steps == 1:
        kernel_a = functools.partial(_backbone_single_kernel, inv_hw=inv_hw)
        scratch = []
    else:
        kernel_a = functools.partial(_backbone_multi_kernel, inv_hw=inv_hw)
        scratch = [pltpu.VMEM((8, F_pad), jnp.float32)]

    feat = pl.pallas_call(
        kernel_a,
        out_shape=jax.ShapeDtypeStruct((B, 1, F_pad), jnp.float32),
        grid_spec=pltpu.PrefetchScalarGridSpec(
            num_scalar_prefetch=0,
            grid=(B, k_steps),            # k must stay innermost + "arbitrary"
            in_specs=in_specs,
            out_specs=out_spec,
            scratch_shapes=scratch,
        ),
        compiler_params=pltpu.CompilerParams(
            dimension_semantics=("parallel", "arbitrary"),
            # 48 MiB: above the 16/32 MiB scoped defaults (v5e/v6e, 128 MiB
            # physical) so large spatial tiles are allowed, while staying well
            # inside v7x's 64 MiB physical VMEM.
            vmem_limit_bytes=48 * 1024 * 1024,
        ),
        cost_estimate=cost_a,
    )(x, wbb, bbias)
    feat = feat.reshape(B, F_pad)

    # TODO(synk): for B == 1 on v7x (2 TensorCores) the batch-parallel grid
    # leaves a core idle; a spatial split with per-core partial accumulators
    # and a combine step would be needed to use both cores.

    head_flops = 2 * B * (F_pad * 128 + 128 * 64 + 64 * 32 + 32 * 128
                          + F_pad * 512 + 512 * 512 + 512 * 128)
    cost_b = pl.CostEstimate(
        flops=head_flops,
        transcendentals=B * 128,
        bytes_accessed=(feat.size + wreg.size + wcls.size + wcls3.size
                        + hbias.size + B * 128) * 4)

    out = pl.pallas_call(
        functools.partial(_heads_kernel, f_pad=F_pad),
        out_shape=jax.ShapeDtypeStruct((B, 128), jnp.float32),
        cost_estimate=cost_b,
    )(feat, wreg, wcls, wcls3, hbias)

    return out[:, 0:4], out[:, 4:4 + num_labels]


def init_params(key, c_in, in_features, num_labels):
    """Natural-shape synthetic weights: Linear weights (in, out), biases (out,)."""
    dims = [
        ("bb", c_in, in_features),
        ("r1", in_features, 128), ("r2", 128, 64), ("r3", 64, 32), ("r4", 32, 4),
        ("c1", in_features, 512), ("c2", 512, 512), ("c3", 512, num_labels),
    ]
    keys = jax.random.split(key, len(dims))
    params = {}
    for kk, (name, din, dout) in zip(keys, dims):
        kw, kb = jax.random.split(kk)
        params[f"w_{name}"] = (jax.random.normal(kw, (din, dout), jnp.float32)
                               * (1.0 / jnp.sqrt(din)))
        params[f"b_{name}"] = jax.random.normal(kb, (dout,), jnp.float32) * 0.01
    return params


def pack_params(params, in_features, num_labels):
    """Pack weights/biases into lane-dense buffers (F padded to 128)."""
    F = in_features
    F_pad = ((F + 127) // 128) * 128
    assert num_labels <= 124
    C = params["w_bb"].shape[0]

    # backbone: channel-mix weight + bias, lane-padded to F_pad
    wbb = jnp.zeros((C, F_pad), jnp.float32).at[:, 0:F].set(params["w_bb"])
    bbias = jnp.zeros((1, F_pad), jnp.float32).at[0, 0:F].set(params["b_bb"])

    # regressor weights -> one (F_pad+224, 128) buffer (bbox -> lanes 0:4)
    wreg = jnp.zeros((F_pad + 224, 128), jnp.float32)
    wreg = wreg.at[0:F, :].set(params["w_r1"])
    wreg = wreg.at[F_pad:F_pad + 128, 0:64].set(params["w_r2"])
    wreg = wreg.at[F_pad + 128:F_pad + 192, 0:32].set(params["w_r3"])
    wreg = wreg.at[F_pad + 192:F_pad + 224, 0:4].set(params["w_r4"])

    # classifier layers 1+2 -> one (F_pad+512, 512) buffer
    wcls = jnp.zeros((F_pad + 512, 512), jnp.float32)
    wcls = wcls.at[0:F, :].set(params["w_c1"])
    wcls = wcls.at[F_pad:F_pad + 512, :].set(params["w_c2"])

    # final classifier projection, lane-padded to 128 (logits -> lanes 4:4+L)
    wcls3 = jnp.zeros((512, 128), jnp.float32).at[:, 4:4 + num_labels].set(
        params["w_c3"])

    # head biases -> one (8, 512) buffer
    hbias = jnp.zeros((8, 512), jnp.float32)
    hbias = hbias.at[0, 0:128].set(params["b_r1"])
    hbias = hbias.at[1, 0:64].set(params["b_r2"])
    hbias = hbias.at[2, 0:32].set(params["b_r3"])
    hbias = hbias.at[3, 0:4].set(params["b_r4"])
    hbias = hbias.at[4, 0:512].set(params["b_c1"])
    hbias = hbias.at[5, 0:512].set(params["b_c2"])
    hbias = hbias.at[6, 4:4 + num_labels].set(params["b_c3"])

    return (wbb, bbias, wreg, wcls, wcls3, hbias)


def reference_forward(x_nchw, params, compute_dtype=jnp.bfloat16):
    """Pure-JAX reference matching the module semantics; the backbone matmul
    uses the same low-precision inputs the kernel consumes, so the comparison
    isolates kernel correctness from the deliberate bf16 input cast."""
    B, C, H, W = x_nchw.shape
    x = jnp.transpose(x_nchw.reshape(B, C, H * W), (0, 2, 1)).astype(compute_dtype)
    wbb = params["w_bb"].astype(compute_dtype)
    h = (jnp.einsum("bsc,cf->bsf", x, wbb, preferred_element_type=jnp.float32)
         + params["b_bb"])
    feat = jnp.mean(jnp.maximum(h, 0.0), axis=1)

    def lin(v, w, b):
        return v @ w + b

    r = jnp.maximum(lin(feat, params["w_r1"], params["b_r1"]), 0.0)
    r = jnp.maximum(lin(r, params["w_r2"], params["b_r2"]), 0.0)
    r = jnp.maximum(lin(r, params["w_r3"], params["b_r3"]), 0.0)
    bboxes = jax.nn.sigmoid(lin(r, params["w_r4"], params["b_r4"]))

    c = jnp.maximum(lin(feat, params["w_c1"], params["b_c1"]), 0.0)
    c = jnp.maximum(lin(c, params["w_c2"], params["b_c2"]), 0.0)
    logits = lin(c, params["w_c3"], params["b_c3"])
    return bboxes, logits


if __name__ == "__main__":
    B, C, H, W = 2, 4, 16, 16
    IN_FEATURES = 32          # base_model.fc.in_features (synthetic backbone width)
    NUM_LABELS = 10

    key = jax.random.PRNGKey(0)
    kx, kp = jax.random.split(key)
    x = jax.random.normal(kx, (B, C, H, W), jnp.float32)
    params = init_params(kp, C, IN_FEATURES, NUM_LABELS)
    packed = pack_params(params, IN_FEATURES, NUM_LABELS)

    # Default path: k axis collapsed (one spatial block per batch).
    fwd = jax.jit(functools.partial(bbox_detection_forward, num_labels=NUM_LABELS))
    bboxes, logits = fwd(x, packed)
    jax.block_until_ready((bboxes, logits))

    # Forced multi-step path: exercises the (8, F_pad) accumulator grid.
    fwd_tiled = jax.jit(functools.partial(bbox_detection_forward,
                                          num_labels=NUM_LABELS, tile_hw=64))
    bboxes_t, logits_t = fwd_tiled(x, packed)
    jax.block_until_ready((bboxes_t, logits_t))

    assert bboxes.shape == (B, 4) and logits.shape == (B, NUM_LABELS)
    assert bool(jnp.all((bboxes >= 0.0) & (bboxes <= 1.0)))

    ref_b, ref_l = reference_forward(x, params)
    assert bool(jnp.allclose(bboxes, ref_b, atol=5e-4, rtol=1e-3))
    assert bool(jnp.allclose(logits, ref_l, atol=1e-3, rtol=1e-3))
    assert bool(jnp.allclose(bboxes_t, ref_b, atol=5e-4, rtol=1e-3))
    assert bool(jnp.allclose(logits_t, ref_l, atol=1e-3, rtol=1e-3))
    assert bool(jnp.allclose(bboxes, bboxes_t, atol=1e-4, rtol=1e-4))
    assert bool(jnp.allclose(logits, logits_t, atol=1e-4, rtol=1e-4))

    print("KERNEL_OK")
</pallas_src>

<mosaic_0001>
module attributes {stable_mosaic.version = 11 : i64} {
  func.func @_backbone_single_kernel(%arg0: i32, %arg1: i32, %arg2: memref<1x256x4xbf16, #tpu.memory_space<vmem>>, %arg3: memref<4x128xbf16, #tpu.memory_space<vmem>>, %arg4: memref<1x128xf32, #tpu.memory_space<vmem>>, %arg5: memref<1x1x128xf32, #tpu.memory_space<vmem>>) attributes {dimension_semantics = [#tpu.dimension_semantics<parallel>, #tpu.dimension_semantics<arbitrary>], iteration_bounds = array<i64: 2, 1>, scalar_prefetch = 0 : i64, scratch_operands = 0 : i64, tpu.core_type = #tpu.core_type<tc>, window_params = [{transform_indices = @transform_0, window_bounds = array<i64: 1, 256, 4>}, {pipeline_mode = #tpu.pipeline_mode<synchronous>, transform_indices = @transform_1, window_bounds = array<i64: 4, 128>}, {pipeline_mode = #tpu.pipeline_mode<synchronous>, transform_indices = @transform_2, window_bounds = array<i64: 1, 128>}, {transform_indices = @transform_3, window_bounds = array<i64: 1, 1, 128>}]} {
    %c0 = arith.constant 0 : index
    %c0_0 = arith.constant 0 : index
    %c0_1 = arith.constant 0 : index
    %0 = vector.load %arg2[%c0, %c0_0, %c0_1] : memref<1x256x4xbf16, #tpu.memory_space<vmem>>, vector<1x256x4xbf16>
    %1 = vector.shape_cast %0 : vector<1x256x4xbf16> to vector<256x4xbf16>
    %c0_2 = arith.constant 0 : index
    %c0_3 = arith.constant 0 : index
    %2 = vector.load %arg3[%c0_2, %c0_3] : memref<4x128xbf16, #tpu.memory_space<vmem>>, vector<4x128xbf16>
    %cst = arith.constant dense<0.000000e+00> : vector<256x128xf32>
    %3 = tpu.matmul %1, %2, %cst {dimension_numbers = #tpu.dot_dimension_numbers<[1], [0], [0], [1], [0, 0, 1, 1], [], []>} : vector<256x4xbf16>, vector<4x128xbf16>, vector<256x128xf32> -> vector<256x128xf32>
    %c0_4 = arith.constant 0 : index
    %c0_5 = arith.constant 0 : index
    %4 = vector.load %arg4[%c0_4, %c0_5] : memref<1x128xf32, #tpu.memory_space<vmem>>, vector<1x128xf32>
    %5 = vector.broadcast %4 : vector<1x128xf32> to vector<256x128xf32>
    %6 = arith.addf %3, %5 : vector<256x128xf32>
    %cst_6 = arith.constant 0.000000e+00 : f32
    %7 = vector.broadcast %cst_6 : f32 to vector<256x128xf32>
    %8 = arith.maximumf %6, %7 : vector<256x128xf32>
    %9 = vector.shape_cast %8 : vector<256x128xf32> to vector<32x8x128xf32>
    %cst_7 = arith.constant dense<0.000000e+00> : vector<8x128xf32>
    %10 = vector.multi_reduction <add>, %9, %cst_7 [0] : vector<32x8x128xf32> to vector<8x128xf32>
    %cst_8 = arith.constant dense<0.000000e+00> : vector<128xf32>
    %11 = vector.multi_reduction <add>, %10, %cst_8 [0] : vector<8x128xf32> to vector<128xf32>
    %12 = vector.shape_cast %11 : vector<128xf32> to vector<1x128xf32>
    %cst_9 = arith.constant 3.906250e-03 : f32
    %13 = vector.broadcast %cst_9 : f32 to vector<1x128xf32>
    %14 = arith.mulf %12, %13 : vector<1x128xf32>
    %c0_10 = arith.constant 0 : index
    %c0_11 = arith.constant 0 : index
    %c0_12 = arith.constant 0 : index
    %15 = vector.load %arg5[%c0_10, %c0_11, %c0_12] : memref<1x1x128xf32, #tpu.memory_space<vmem>>, vector<1x1x128xf32>
    %16 = vector.shape_cast %15 : vector<1x1x128xf32> to vector<1x128xf32>
    %17 = vector.shape_cast %14 : vector<1x128xf32> to vector<1x1x128xf32>
    tpu.vector_store %arg5[%c0_10, %c0_11, %c0_12], %17 {strides = array<i32>} : memref<1x1x128xf32, #tpu.memory_space<vmem>>, vector<1x1x128xf32>,
    return
  }
  func.func @transform_0(%arg0: i32, %arg1: i32) -> (i32, i32, i32) {
    %c0_i32 = arith.constant 0 : i32
    %c0_i32_0 = arith.constant 0 : i32
    return %arg0, %arg1, %c0_i32 : i32, i32, i32
  }
  func.func @transform_1(%arg0: i32, %arg1: i32) -> (i32, i32) {
    %c0_i32 = arith.constant 0 : i32
    %c0_i32_0 = arith.constant 0 : i32
    %c0_i32_1 = arith.constant 0 : i32
    return %c0_i32, %c0_i32_0 : i32, i32
  }
  func.func @transform_2(%arg0: i32, %arg1: i32) -> (i32, i32) {
    %c0_i32 = arith.constant 0 : i32
    %c0_i32_0 = arith.constant 0 : i32
    %c0_i32_1 = arith.constant 0 : i32
    return %c0_i32, %c0_i32_0 : i32, i32
  }
  func.func @transform_3(%arg0: i32, %arg1: i32) -> (i32, i32, i32) {
    %c0_i32 = arith.constant 0 : i32
    %c0_i32_0 = arith.constant 0 : i32
    %c0_i32_1 = arith.constant 0 : i32
    return %arg0, %c0_i32, %c0_i32_0 : i32, i32, i32
  }
}

module attributes {stable_mosaic.version = 11 : i64} {
  func.func @_heads_kernel(%arg0: memref<2x128xf32, #tpu.memory_space<vmem>>, %arg1: memref<352x128xf32, #tpu.memory_space<vmem>>, %arg2: memref<640x512xf32, #tpu.memory_space<vmem>>, %arg3: memref<512x128xf32, #tpu.memory_space<vmem>>, %arg4: memref<8x512xf32, #tpu.memory_space<vmem>>, %arg5: memref<2x128xf32, #tpu.memory_space<vmem>>) attributes {dimension_semantics = [], scalar_prefetch = 0 : i64, scratch_operands = 0 : i64, tpu.core_type = #tpu.core_type<tc>} {
    %c0 = arith.constant 0 : index
    %c0_0 = arith.constant 0 : index
    %0 = vector.load %arg0[%c0, %c0_0] : memref<2x128xf32, #tpu.memory_space<vmem>>, vector<2x128xf32>
    %c0_1 = arith.constant 0 : index
    %c0_2 = arith.constant 0 : index
    %1 = vector.load %arg1[%c0_1, %c0_2] : memref<352x128xf32, #tpu.memory_space<vmem>>, vector<128x128xf32>
    %cst = arith.constant dense<0.000000e+00> : vector<2x128xf32>
    %2 = tpu.matmul %0, %1, %cst {dimension_numbers = #tpu.dot_dimension_numbers<[1], [0], [0], [1], [0, 0, 1, 1], [], []>} : vector<2x128xf32>, vector<128x128xf32>, vector<2x128xf32> -> vector<2x128xf32>
    %c0_3 = arith.constant 0 : index
    %c0_4 = arith.constant 0 : index
    %3 = vector.load %arg4[%c0_3, %c0_4] : memref<8x512xf32, #tpu.memory_space<vmem>>, vector<1x128xf32>
    %4 = vector.broadcast %3 : vector<1x128xf32> to vector<2x128xf32>
    %5 = arith.addf %2, %4 : vector<2x128xf32>
    %cst_5 = arith.constant 0.000000e+00 : f32
    %6 = vector.broadcast %cst_5 : f32 to vector<2x128xf32>
    %7 = arith.maximumf %5, %6 : vector<2x128xf32>
    %c128 = arith.constant 128 : index
    %c0_6 = arith.constant 0 : index
    %8 = vector.load %arg1[%c128, %c0_6] : memref<352x128xf32, #tpu.memory_space<vmem>>, vector<128x64xf32>
    %cst_7 = arith.constant dense<0.000000e+00> : vector<2x64xf32>
    %9 = tpu.matmul %7, %8, %cst_7 {dimension_numbers = #tpu.dot_dimension_numbers<[1], [0], [0], [1], [0, 0, 1, 1], [], []>} : vector<2x128xf32>, vector<128x64xf32>, vector<2x64xf32> -> vector<2x64xf32>
    %c1 = arith.constant 1 : index
    %c0_8 = arith.constant 0 : index
    %10 = vector.load %arg4[%c1, %c0_8] : memref<8x512xf32, #tpu.memory_space<vmem>>, vector<1x64xf32>
    %11 = vector.broadcast %10 : vector<1x64xf32> to vector<2x64xf32>
    %12 = arith.addf %9, %11 : vector<2x64xf32>
    %cst_9 = arith.constant 0.000000e+00 : f32
    %13 = vector.broadcast %cst_9 : f32 to vector<2x64xf32>
    %14 = arith.maximumf %12, %13 : vector<2x64xf32>
    %c256 = arith.constant 256 : index
    %c0_10 = arith.constant 0 : index
    %15 = vector.load %arg1[%c256, %c0_10] : memref<352x128xf32, #tpu.memory_space<vmem>>, vector<64x32xf32>
    %cst_11 = arith.constant dense<0.000000e+00> : vector<2x32xf32>
    %16 = tpu.matmul %14, %15, %cst_11 {dimension_numbers = #tpu.dot_dimension_numbers<[1], [0], [0], [1], [0, 0, 1, 1], [], []>} : vector<2x64xf32>, vector<64x32xf32>, vector<2x32xf32> -> vector<2x32xf32>
    %c2 = arith.constant 2 : index
    %c0_12 = arith.constant 0 : index
    %17 = vector.load %arg4[%c2, %c0_12] : memref<8x512xf32, #tpu.memory_space<vmem>>, vector<1x32xf32>
    %18 = vector.broadcast %17 : vector<1x32xf32> to vector<2x32xf32>
    %19 = arith.addf %16, %18 : vector<2x32xf32>
    %cst_13 = arith.constant 0.000000e+00 : f32
    %20 = vector.broadcast %cst_13 : f32 to vector<2x32xf32>
    %21 = arith.maximumf %19, %20 : vector<2x32xf32>
    %c320 = arith.constant 320 : index
    %c0_14 = arith.constant 0 : index
    %22 = vector.load %arg1[%c320, %c0_14] : memref<352x128xf32, #tpu.memory_space<vmem>>, vector<32x128xf32>
    %cst_15 = arith.constant dense<0.000000e+00> : vector<2x128xf32>
    %23 = tpu.matmul %21, %22, %cst_15 {dimension_numbers = #tpu.dot_dimension_numbers<[1], [0], [0], [1], [0, 0, 1, 1], [], []>} : vector<2x32xf32>, vector<32x128xf32>, vector<2x128xf32> -> vector<2x128xf32>
    %c3 = arith.constant 3 : index
    %c0_16 = arith.constant 0 : index
    %24 = vector.load %arg4[%c3, %c0_16] : memref<8x512xf32, #tpu.memory_space<vmem>>, vector<1x128xf32>
    %25 = vector.broadcast %24 : vector<1x128xf32> to vector<2x128xf32>
    %26 = arith.addf %23, %25 : vector<2x128xf32>
    %c0_17 = arith.constant 0 : index
    %c0_18 = arith.constant 0 : index
    %27 = vector.load %arg2[%c0_17, %c0_18] : memref<640x512xf32, #tpu.memory_space<vmem>>, vector<128x512xf32>
    %cst_19 = arith.constant dense<0.000000e+00> : vector<2x512xf32>
    %28 = tpu.matmul %0, %27, %cst_19 {dimension_numbers = #tpu.dot_dimension_numbers<[1], [0], [0], [1], [0, 0, 1, 1], [], []>} : vector<2x128xf32>, vector<128x512xf32>, vector<2x512xf32> -> vector<2x512xf32>
    %c4 = arith.constant 4 : index
    %c0_20 = arith.constant 0 : index
    %29 = vector.load %arg4[%c4, %c0_20] : memref<8x512xf32, #tpu.memory_space<vmem>>, vector<1x512xf32>
    %30 = vector.broadcast %29 : vector<1x512xf32> to vector<2x512xf32>
    %31 = arith.addf %28, %30 : vector<2x512xf32>
    %cst_21 = arith.constant 0.000000e+00 : f32
    %32 = vector.broadcast %cst_21 : f32 to vector<2x512xf32>
    %33 = arith.maximumf %31, %32 : vector<2x512xf32>
    %c128_22 = arith.constant 128 : index
    %c0_23 = arith.constant 0 : index
    %34 = vector.load %arg2[%c128_22, %c0_23] : memref<640x512xf32, #tpu.memory_space<vmem>>, vector<512x512xf32>
    %cst_24 = arith.constant dense<0.000000e+00> : vector<2x512xf32>
    %35 = tpu.matmul %33, %34, %cst_24 {dimension_numbers = #tpu.dot_dimension_numbers<[1], [0], [0], [1], [0, 0, 1, 1], [], []>} : vector<2x512xf32>, vector<512x512xf32>, vector<2x512xf32> -> vector<2x512xf32>
    %c5 = arith.constant 5 : index
    %c0_25 = arith.constant 0 : index
    %36 = vector.load %arg4[%c5, %c0_25] : memref<8x512xf32, #tpu.memory_space<vmem>>, vector<1x512xf32>
    %37 = vector.broadcast %36 : vector<1x512xf32> to vector<2x512xf32>
    %38 = arith.addf %35, %37 : vector<2x512xf32>
    %cst_26 = arith.constant 0.000000e+00 : f32
    %39 = vector.broadcast %cst_26 : f32 to vector<2x512xf32>
    %40 = arith.maximumf %38, %39 : vector<2x512xf32>
    %c0_27 = arith.constant 0 : index
    %c0_28 = arith.constant 0 : index
    %41 = vector.load %arg3[%c0_27, %c0_28] : memref<512x128xf32, #tpu.memory_space<vmem>>, vector<512x128xf32>
    %cst_29 = arith.constant dense<0.000000e+00> : vector<2x128xf32>
    %42 = tpu.matmul %40, %41, %cst_29 {dimension_numbers = #tpu.dot_dimension_numbers<[1], [0], [0], [1], [0, 0, 1, 1], [], []>} : vector<2x512xf32>, vector<512x128xf32>, vector<2x128xf32> -> vector<2x128xf32>
    %c6 = arith.constant 6 : index
    %c0_30 = arith.constant 0 : index
    %43 = vector.load %arg4[%c6, %c0_30] : memref<8x512xf32, #tpu.memory_space<vmem>>, vector<1x128xf32>
    %44 = vector.broadcast %43 : vector<1x128xf32> to vector<2x128xf32>
    %45 = arith.addf %42, %44 : vector<2x128xf32>
    %46 = tpu.iota {dimensions = array<i32: 1>} : vector<2x128xi32>
    %c4_i32 = arith.constant 4 : i32
    %47 = vector.broadcast %c4_i32 : i32 to vector<2x128xi32>
    %48 = arith.cmpi slt, %46, %47 : vector<2x128xi32>
    %49 = arith.negf %26 : vector<2x128xf32>
    %50 = math.exp %49 : vector<2x128xf32>
    %cst_31 = arith.constant 1.000000e+00 : f32
    %51 = vector.broadcast %cst_31 : f32 to vector<2x128xf32>
    %52 = arith.addf %51, %50 : vector<2x128xf32>
    %53 = arith.divf %51, %52 : vector<2x128xf32>
    %54 = arith.select %48, %53, %45 : vector<2x128xi1>, vector<2x128xf32>
    %c0_32 = arith.constant 0 : index
    %c0_33 = arith.constant 0 : index
    %55 = vector.load %arg5[%c0_32, %c0_33] : memref<2x128xf32, #tpu.memory_space<vmem>>, vector<2x128xf32>
    tpu.vector_store %arg5[%c0_32, %c0_33], %54 {strides = array<i32>} : memref<2x128xf32, #tpu.memory_space<vmem>>, vector<2x128xf32>,
    return
  }
}

</mosaic_0001>

<bundles_post_ra>
// kernel: bbox_detection_forward.2
= control target key start
LH: loop header
LB: loop body
LE: loop exit
PB: predicated region body
PF: predicated region fallthrough
CT: control target
= control target key end

     0   :  { %8 = vsyncpa [#allocation3], 0  ;;  %s914_s12 = smov 0   ;;  %s916_s13 = smov 0   ;;  %s1051_s0 = inlined_call_operand.vmem [shape: bf16[2,256,4], index: 0, kind: input, shape index: {}]   ;;  %s1052_s1 = inlined_call_operand.vmem [shape: bf16[4,128], index: 1, kind: input, shape index: {}]   ;;  %s1053_s2 = inlined_call_operand.hbm [shape: f32[1,128], index: 2, kind: input, shape index: {}]   ;;  %s1054_s3 = inlined_call_operand.vmem [shape: f32[2,1,128], index: 3, kind: output, shape index: {}]  }
   0x1   :  { %s918_s14 = smov 0  }
   0x2 LB: > { %s688_s15 = sadd.s32 4294967295, %s891_s14   ;;  %s26_s16 = sadd.s32 1, %s887_s13  ;;  %s891_s14 = sphi %s918_s14, %s14_s14   ;;  %s887_s13 = sphi %s916_s13, %s1058_s13   ;;  %s883_s12 = sphi %s914_s12, %s1057_s12  }
   0x3   : > { %p28_p0 = scmp.ge.s32.totalorder %s26_s16, 2  ;;  %p690_p1 = scmp.ge.s32.totalorder %s891_s14, 1 }
   0x4   : > { %p127_p2 = scmp.lt.s32.totalorder %s891_s14, 3  ;;  %p939_p4 = scmp.eq.s32.totalorder %s688_s15, 0 }
   0x5   : > { %s1060_s16 = smov (%p28_p0, %s26_s16), 0  ;;  %s893_s19 = smov [#allocation2]  }
   0x6   : > { %p935_p3 = pnand %p690_p1, %p127_p2  ;;  %s143_s20 = sshll.u32 %s893_s19, 4  ;;  %s144_s20 = int_to_ptr.vmem [resolvable:$true] %s143_s20 }
   0x7   : > { %s850_s21 = scalar_lea.vmem %s144_s20, 16  ;;  %s857_s22 = scalar_lea.vmem %s144_s20, 32 }
   0x8   : > { %p792_p5 = pneg %p935_p3  ;;  %p851_p8 = scmp.ne.s32.totalorder %s144_s20, %s850_s21 }
   0x9   : > { %p858_p11 = scmp.lt.s32.totalorder %s144_s20, %s144_s20  ;;  %p859_p12 = scmp.lt.s32.totalorder %s857_s22, %s850_s21 }
   0xa   : > { %p793_p6 = pnand %p939_p4, %p792_p5 }
   0xb   : > { %p860_p13 = por %p859_p12, %p858_p11 }
   0xc   : > { %p841_p7 = pneg %p793_p6 }
   0xe   : > { %p853_p9 = pnand %p851_p8, %p841_p7 }
  0x10   : > { %p854_p10 = pneg %p853_p9 }
  0x12   : > { %p861_p0 = pnand %p860_p13, %p854_p10 }
  0x14   : > { %864 = shalt.err (!%p861_p0)
}
  0x15   : > { %795 = dma.hbm_to_vmem [thread:$0]  (!%p793_p6), %s1053_s2, 16, %s144_s20, [#allocation3]  }
  0x16   : > { %169 = sbr.rel (%p935_p3) target bundleno = 315 (0x13b), region = 32 }
  0x1b   : > { %878 = dma.done.wait (%p939_p4), [#allocation3], 16  }
  0x1c   : > { %880 = vsyncadd (%p939_p4), [#allocation3], 4294967280  ;;  %p196_p1 = scmp.lt.s32.totalorder %s883_s12, 1  ;;  %vm378_vm0 = vcmask 1041408   ;;  %vm329_vm1 = vcmask 31744  }
  0x1d   : > { %v241_v0 = vld [vmem:[%s1052_s1] sm:$0x3] }
  0x1e   : > { %s1062_s12 = smov (!%p196_p1, %s883_s12), 1  ;;  %786 = vmatprep.subr.msk.bf16.mxu0 %vm378_vm0, %v241_v0  ;;  %v380_v1 = vsel %vm378_vm0, %v241_v0, 0  ;;  %787 = vmatprep.subr.msk.bf16.mxu1 %vm378_vm0, %v241_v0  ;;  %v1001_v20 = vld [vmem:[#allocation2] ss:$0 sm:$0xff] }
  0x1f   : > { %s732_s25 = sshll.u32 %s1062_s12, 7  ;;  %751 = vmatpush3.bf16.msra.mxu0 %v380_v1  ;;  %785 = vmatpush3.bf16.msra.mxu1 %v380_v1  ;;  %s207_s6 = scalar_lea.vmem %s1054_s3, %s1062_s12 }
  0x20   : > { %s964_s28 = scalar_lea.vmem %s1051_s0, %s732_s25 }
  0x21   : > { %v823_v2 = vld [vmem:[%s964_s28] sm:$0xff]   ;;  %v824_v3 = vld [vmem:[%s964_s28 + $0x8] sm:$0xff]   ;;  %v825_v4 = vld [vmem:[%s964_s28 + $0x10] sm:$0xff]  }
  0x22   : > { %752 = vmatprep.mubr.msk.bf16.mxu0 %vm329_vm1, %v823_v2  ;;  %v826_v5 = vld [vmem:[%s964_s28 + $0x18] sm:$0xff]   ;;  %v827_v6 = vld [vmem:[%s964_s28 + $0x20] sm:$0xff]   ;;  %v832_v8 = vld [vmem:[%s964_s28 + $0x48] sm:$0xff]  }
  0x23   : > { %753 = vmatmul.mubr.msk.bf16.vlgmr.msra.gmra.mxu0 %vm329_vm1, %v824_v3  ;;  %v831_v7 = vld [vmem:[%s964_s28 + $0x40] sm:$0xff]   ;;  %v833_v9 = vld [vmem:[%s964_s28 + $0x50] sm:$0xff]   ;;  %v834_v10 = vld [vmem:[%s964_s28 + $0x58] sm:$0xff]  }
  0x24   : > { %756 = vmatprep.mubr.msk.bf16.mxu0 %vm329_vm1, %v825_v4  ;;  %768 = vmatprep.mubr.msk.bf16.mxu1 %vm329_vm1, %v831_v7  ;;  %v828_v11 = vld [vmem:[%s964_s28 + $0x28] sm:$0xff]   ;;  %v835_v12 = vld [vmem:[%s964_s28 + $0x60] sm:$0xff]   ;;  %v829_v13 = vld [vmem:[%s964_s28 + $0x30] sm:$0xff]  }
  0x25   : > { %769 = vmatmul.mubr.msk.bf16.vlgmr.msra.gmra.mxu1 %vm329_vm1, %v832_v8  ;;  %v836_v14 = vld [vmem:[%s964_s28 + $0x68] sm:$0xff]   ;;  %v830_v15 = vld [vmem:[%s964_s28 + $0x38] sm:$0xff]   ;;  %v837_v16 = vld [vmem:[%s964_s28 + $0x70] sm:$0xff]  }
  0x26   : > { %772 = vmatprep.mubr.msk.bf16.mxu1 %vm329_vm1, %v833_v9  ;;  %v838_v17 = vld [vmem:[%s964_s28 + $0x78] sm:$0xff]  }
  0x2b   : > { %757 = vmatmul.mubr.msk.bf16.gmra.mxu0 %vm329_vm1, %v826_v5 }
  0x2c   : > { %760 = vmatprep.mubr.msk.bf16.mxu0 %vm329_vm1, %v827_v6 }
  0x2d   : > { %773 = vmatmul.mubr.msk.bf16.gmra.mxu1 %vm329_vm1, %v834_v10 }
  0x2e   : > { %776 = vmatprep.mubr.msk.bf16.mxu1 %vm329_vm1, %v835_v12 }
  0x33   : > { %761 = vmatmul.mubr.msk.bf16.gmra.mxu0 %vm329_vm1, %v828_v11 }
  0x34   : > { %764 = vmatprep.mubr.msk.bf16.mxu0 %vm329_vm1, %v829_v13 }
  0x35   : > { %777 = vmatmul.mubr.msk.bf16.gmra.mxu1 %vm329_vm1, %v836_v14 }
  0x36   : > { %780 = vmatprep.mubr.msk.bf16.mxu1 %vm329_vm1, %v837_v16 }
  0x3b   : > { %765 = vmatmul.mubr.msk.bf16.gmra.mxu0 %vm329_vm1, %v830_v15 }
  0x3d   : > { %781 = vmatmul.mubr.msk.bf16.gmra.mxu1 %vm329_vm1, %v838_v17 }
  0xe3   : > { %v754_v18 = vpop.f32.mrf.mxu0 }
  0xe4   : > { %v425_v24 = vadd.f32 %v754_v18, %v1001_v20 }
  0xe5   : > { %v416_v19 = vpop.f32.mrf.mxu0  ;;  %v1006_v26 = vpop.f32.mrf.mxu1 }
  0xe6   : > { %v417_v22 = vadd.f32 %v1001_v20, %v416_v19  ;;  %v545_v33 = vmax.f32 %v425_v24, 0.0 }
  0xe7   : > { %v755_v21 = vpop.f32.mrf.mxu0  ;;  %v480_v31 = vpop.f32.mrf.mxu1 }
  0xe8   : > { %v543_v28 = vmax.f32 %v417_v22, 0.0  ;;  %v428_v29 = vadd.f32 %v755_v21, %v1001_v20 }
  0xe9   : > { %v419_v23 = vpop.f32.mrf.mxu0  ;;  %v771_v36 = vpop.f32.mrf.mxu1 }
  0xea   : > { %v420_v25 = vadd.f32 %v1001_v20, %v419_v23  ;;  %v546_v38 = vmax.f32 %v428_v29, 0.0 }
  0xeb   : > { %v758_v27 = vpop.f32.mrf.mxu0  ;;  %v483_v40 = vpop.f32.mrf.mxu1 }
  0xec   : > { %v544_v30 = vmax.f32 %v420_v25, 0.0  ;;  %v441_v42 = vadd.f32 %v758_v27, %v1001_v20  ;;  %v481_v25 = vadd.f32 %v1001_v20, %v480_v31 }
  0xed   : > { %v432_v32 = vpop.f32.mrf.mxu0  ;;  %v774_v46 = vpop.f32.mrf.mxu1 }
  0xee   : > { %v575_v34 = vadd.f32 %v544_v30, %v543_v28  ;;  %v433_v35 = vadd.f32 %v1001_v20, %v432_v32  ;;  %v549_v53 = vmax.f32 %v441_v42, 0.0  ;;  %v484_v30 = vadd.f32 %v1001_v20, %v483_v40 }
  0xef   : > { %v759_v37 = vpop.f32.mrf.mxu0  ;;  %v496_v52 = vpop.f32.mrf.mxu1 }
  0xf0   : > { %v576_v39 = vadd.f32 %v575_v34, %v545_v33  ;;  %v547_v43 = vmax.f32 %v433_v35, 0.0  ;;  %v444_v49 = vadd.f32 %v759_v37, %v1001_v20  ;;  %v489_v33 = vadd.f32 %v1006_v26, %v1001_v20 }
  0xf1   : > { %v435_v41 = vpop.f32.mrf.mxu0  ;;  %v775_v60 = vpop.f32.mrf.mxu1  ;;  %v559_v34 = vmax.f32 %v481_v25, 0.0  ;;  %v492_v37 = vadd.f32 %v771_v36, %v1001_v20  ;;  %v497_v31 = vadd.f32 %v1001_v20, %v496_v52 }
  0xf2   : > { %v577_v44 = vadd.f32 %v576_v39, %v546_v38  ;;  %v436_v45 = vadd.f32 %v1001_v20, %v435_v41  ;;  %v550_v57 = vmax.f32 %v444_v49, 0.0  ;;  %v560_v38 = vmax.f32 %v484_v30, 0.0 }
  0xf3   : > { %v762_v47 = vpop.f32.mrf.mxu0  ;;  %v499_v6 = vpop.f32.mrf.mxu1  ;;  %v561_v42 = vmax.f32 %v489_v33, 0.0  ;;  %v563_v49 = vmax.f32 %v497_v31, 0.0 }
  0xf4   : > { %v578_v48 = vadd.f32 %v577_v44, %v547_v43  ;;  %v548_v50 = vmax.f32 %v436_v45, 0.0  ;;  %v457_v61 = vadd.f32 %v762_v47, %v1001_v20  ;;  %v562_v44 = vmax.f32 %v492_v37, 0.0 }
  0xf5   : > { %v448_v51 = vpop.f32.mrf.mxu0  ;;  %v778_v14 = vpop.f32.mrf.mxu1  ;;  %v500_v47 = vadd.f32 %v1001_v20, %v499_v6 }
  0xf6   : > { %v579_v54 = vadd.f32 %v578_v48, %v548_v50  ;;  %v449_v55 = vadd.f32 %v1001_v20, %v448_v51  ;;  %v553_v7 = vmax.f32 %v457_v61, 0.0  ;;  %v505_v48 = vadd.f32 %v774_v46, %v1001_v20 }
  0xf7   : > { %v763_v56 = vpop.f32.mrf.mxu0  ;;  %v512_v23 = vpop.f32.mrf.mxu1  ;;  %v508_v51 = vadd.f32 %v775_v60, %v1001_v20  ;;  %v564_v36 = vmax.f32 %v500_v47, 0.0  ;;  %v521_v61 = vadd.f32 %v778_v14, %v1001_v20 }
  0xf8   : > { %v580_v58 = vadd.f32 %v579_v54, %v549_v53  ;;  %v551_v62 = vmax.f32 %v449_v55, 0.0  ;;  %v460_v3 = vadd.f32 %v763_v56, %v1001_v20  ;;  %v565_v54 = vmax.f32 %v505_v48, 0.0 }
  0xf9   : > { %v451_v59 = vpop.f32.mrf.mxu0  ;;  %v779_v32 = vpop.f32.mrf.mxu1  ;;  %v513_v56 = vadd.f32 %v1001_v20, %v512_v23 }
  0xfa   : > { %v581_v63 = vadd.f32 %v580_v58, %v550_v57  ;;  %v452_v0 = vadd.f32 %v1001_v20, %v451_v59  ;;  %v554_v11 = vmax.f32 %v460_v3, 0.0  ;;  %v566_v57 = vmax.f32 %v508_v51, 0.0 }
  0xfb   : > { %v766_v1 = vpop.f32.mrf.mxu0  ;;  %v515_v41 = vpop.f32.mrf.mxu1 }
  0xfc   : > { %v582_v2 = vadd.f32 %v581_v63, %v551_v62  ;;  %v552_v4 = vmax.f32 %v452_v0, 0.0  ;;  %v473_v15 = vadd.f32 %v766_v1, %v1001_v20  ;;  %v516_v58 = vadd.f32 %v1001_v20, %v515_v41 }
  0xfd   : > { %v464_v5 = vpop.f32.mrf.mxu0  ;;  %v782_v40 = vpop.f32.mrf.mxu1  ;;  %v567_v62 = vmax.f32 %v513_v56, 0.0  ;;  %v524_v0 = vadd.f32 %v779_v32, %v1001_v20 }
  0xfe   : > { %v583_v8 = vadd.f32 %v582_v2, %v552_v4  ;;  %v465_v9 = vadd.f32 %v1001_v20, %v464_v5  ;;  %v557_v24 = vmax.f32 %v473_v15, 0.0  ;;  %v568_v1 = vmax.f32 %v516_v58, 0.0 }
  0xff   : > { %v767_v10 = vpop.f32.mrf.mxu0  ;;  %v528_v53 = vpop.f32.mrf.mxu1  ;;  %v569_v2 = vmax.f32 %v521_v61, 0.0  ;;  %v570_v5 = vmax.f32 %v524_v0, 0.0 }
 0x100   : > { %v584_v12 = vadd.f32 %v583_v8, %v553_v7  ;;  %v555_v16 = vmax.f32 %v465_v9, 0.0  ;;  %v476_v21 = vadd.f32 %v767_v10, %v1001_v20  ;;  %v529_v4 = vadd.f32 %v1001_v20, %v528_v53 }
 0x101   : > { %v467_v13 = vpop.f32.mrf.mxu0  ;;  %v783_v59 = vpop.f32.mrf.mxu1  ;;  %v537_v8 = vadd.f32 %v782_v40, %v1001_v20 }
 0x102   : > { %v585_v17 = vadd.f32 %v584_v12, %v554_v11  ;;  %v468_v18 = vadd.f32 %v1001_v20, %v467_v13  ;;  %v558_v28 = vmax.f32 %v476_v21, 0.0  ;;  %v571_v9 = vmax.f32 %v529_v4, 0.0 }
 0x103   : > { %v531_v60 = vpop.f32.mrf.mxu1  ;;  %v540_v12 = vadd.f32 %v783_v59, %v1001_v20  ;;  %v573_v14 = vmax.f32 %v537_v8, 0.0 }
 0x104   : > { %v586_v19 = vadd.f32 %v585_v17, %v555_v16  ;;  %v556_v22 = vmax.f32 %v468_v18, 0.0  ;;  %v532_v7 = vadd.f32 %v1001_v20, %v531_v60 }
 0x105   : > { %v574_v16 = vmax.f32 %v540_v12, 0.0 }
 0x106   : > { %v587_v27 = vadd.f32 %v586_v19, %v556_v22  ;;  %v572_v13 = vmax.f32 %v532_v7, 0.0 }
 0x108   : > { %v588_v29 = vadd.f32 %v587_v27, %v557_v24 }
 0x10a   : > { %v589_v35 = vadd.f32 %v588_v29, %v558_v28 }
 0x10c   : > { %v590_v39 = vadd.f32 %v589_v35, %v559_v34 }
 0x10e   : > { %v591_v43 = vadd.f32 %v590_v39, %v560_v38 }
 0x110   : > { %v592_v45 = vadd.f32 %v591_v43, %v561_v42 }
 0x112   : > { %v593_v26 = vadd.f32 %v592_v45, %v562_v44 }
 0x114   : > { %v594_v50 = vadd.f32 %v593_v26, %v563_v49 }
 0x116   : > { %v595_v55 = vadd.f32 %v594_v50, %v564_v36 }
 0x118   : > { %v596_v52 = vadd.f32 %v595_v55, %v565_v54 }
 0x11a   : > { %v597_v46 = vadd.f32 %v596_v52, %v566_v57 }
 0x11c   : > { %v598_v63 = vadd.f32 %v597_v46, %v567_v62 }
 0x11e   : > { %v599_v3 = vadd.f32 %v598_v63, %v568_v1 }
 0x120   : > { %v600_v6 = vadd.f32 %v599_v3, %v569_v2 }
 0x122   : > { %v601_v10 = vadd.f32 %v600_v6, %v570_v5 }
 0x124   : > { %v602_v11 = vadd.f32 %v601_v10, %v571_v9 }
 0x126   : > { %v603_v15 = vadd.f32 %v602_v11, %v572_v13 }
 0x128   : > { %v604_v17 = vadd.f32 %v603_v15, %v573_v14 }
 0x12a   : > { %v605_v18 = vadd.f32 %v604_v17, %v574_v16 }
 0x12c   : > { %v606_v19 = vrot.slane %v605_v18, 4 }
 0x12e   : > { %v607_v21 = vadd.f32 %v606_v19, %v605_v18 }
 0x130   : > { %v608_v22 = vrot.slane %v607_v21, 2 }
 0x132   : > { %v609_v23 = vadd.f32 %v608_v22, %v607_v21 }
 0x134   : > { %v610_v24 = vrot.slane %v609_v23, 1 }
 0x136   : > { %v611_v25 = vadd.f32 %v610_v24, %v609_v23 }
 0x138   : > { %v612_v27 = vmul.f32 0.00390625, %v611_v25 }
 0x13a   : > { %613 = vst [vmem:[%s207_s6] sm:$0x1] %v612_v27 }
 0x13b PF: > { %s14_s14 = sadd.s32 1, %s891_s14   ;;  %s1057_s12 = smov %s887_s13 }
 0x13c   : > { %p11_p2 = scmp.ge.s32.totalorder %s14_s14, 4   ;;  %s1058_s13 = smov %s1060_s16 }
 0x13e   :  { %13 = sbr.rel (!%p11_p2) target bundleno = 2 (0x2), region = 67 }
 0x143   :  { %631 = vsyncpa [#allocation3], 1 }
 0x144   :  { %633 = vsyncpa [#allocation3 + $0x1], 1 }

// kernel: bbox_detection_forward.3
= control target key start
LH: loop header
LB: loop body
LE: loop exit
PB: predicated region body
PF: predicated region fallthrough
CT: control target
= control target key end

     0   :  { %10 = vsyncpa [#allocation3], 0  ;;  %s1928_s0 = inlined_call_operand.vmem [shape: f32[2,128], index: 0, kind: input, shape index: {}]   ;;  %s1929_s1 = inlined_call_operand.hbm [shape: f32[352,128], index: 1, kind: input, shape index: {}]   ;;  %s1930_s2 = inlined_call_operand.hbm [shape: f32[640,512], index: 2, kind: input, shape index: {}]   ;;  %s1931_s3 = inlined_call_operand.hbm [shape: f32[512,128], index: 3, kind: input, shape index: {}]   ;;  %s1932_s4 = inlined_call_operand.hbm [shape: f32[8,512], index: 4, kind: input, shape index: {}]   ;;  %s1933_s5 = inlined_call_operand.vmem [shape: f32[2,128], index: 5, kind: output, shape index: {}]  }
   0x1   :  { %11 = vsyncpa [#allocation5], 0 }
   0x2   :  { %12 = vsyncpa [#allocation8], 0  ;;  %s1757_s18 = smov [#allocation4]  }
   0x3   :  { %s32_s19 = sshll.u32 %s1757_s18, 4  ;;  %s33_s19 = int_to_ptr.vmem [resolvable:$true] %s32_s19 }
   0x4   :  { %s1679_s20 = scalar_lea.vmem %s33_s19, 40960  ;;  %p1684_p1 = scmp.lt.s32.totalorder %s33_s19, %s33_s19 }
   0x5   :  { %p1680_p0 = scmp.ne.s32.totalorder %s33_s19, %s1679_s20  ;;  %p1685_p2 = scmp.lt.s32.totalorder %s1679_s20, %s1679_s20 }
   0x7   :  { %p1686_p3 = por %p1685_p2, %p1684_p1 }
   0x9   :  { %p1687_p4 = pnand %p1686_p3, %p1680_p0 }
   0xb   :  { %1690 = shalt.err (!%p1687_p4)
}
   0xc   :  { %s1758_s21 = smov 512   ;;  %s1759_s22 = smov 32  }
   0xd   :  { %38 = dma.hbm_to_vmem [thread:$0]  %s1930_s2, 40960, %s33_s19, [#allocation5], %s1758_s21, %s1758_s21, %s1759_s22  }
   0xe   :  { %s1760_s25 = smov [#allocation2]  }
   0xf   :  { %s20_s26 = sshll.u32 %s1760_s25, 4  ;;  %s21_s26 = int_to_ptr.vmem [resolvable:$true] %s20_s26 }
  0x10   :  { %s1699_s27 = scalar_lea.vmem %s21_s26, 5632  ;;  %p1704_p6 = scmp.lt.s32.totalorder %s21_s26, %s21_s26 }
  0x11   :  { %p1700_p5 = scmp.ne.s32.totalorder %s21_s26, %s1699_s27  ;;  %p1705_p7 = scmp.lt.s32.totalorder %s1699_s27, %s1699_s27 }
  0x13   :  { %p1706_p8 = por %p1705_p7, %p1704_p6 }
  0x15   :  { %p1707_p9 = pnand %p1706_p8, %p1700_p5 }
  0x17   :  { %1710 = shalt.err (!%p1707_p9)
}
  0x18   :  { %s1761_s28 = smov 128   ;;  %s1762_s29 = smov 8  }
  0x19   :  { %26 = dma.hbm_to_vmem [thread:$0]  %s1929_s1, 5632, %s21_s26, [#allocation3], %s1761_s28, %s1761_s28, %s1762_s29  }
  0x1a   :  { %s1763_s7 = smov [#allocation6]   ;;  %s1764_s9 = smov [#allocation7]  }
  0x1b   :  { %s44_s8 = sshll.u32 %s1763_s7, 4  ;;  %s57_s2 = sshll.u32 %s1764_s9, 4  ;;  %s45_s8 = int_to_ptr.vmem [resolvable:$true] %s44_s8  ;;  %s58_s2 = int_to_ptr.vmem [resolvable:$true] %s57_s2 }
  0x1c   :  { %s1719_s10 = scalar_lea.vmem %s45_s8, 8192  ;;  %p1724_p11 = scmp.lt.s32.totalorder %s45_s8, %s45_s8 }
  0x1d   :  { %p1720_p10 = scmp.ne.s32.totalorder %s45_s8, %s1719_s10  ;;  %p1725_p12 = scmp.lt.s32.totalorder %s1719_s10, %s1719_s10 }
  0x1f   :  { %p1726_p13 = por %p1725_p12, %p1724_p11 }
  0x21   :  { %p1727_p0 = pnand %p1726_p13, %p1720_p10 }
  0x23   :  { %1730 = shalt.err (!%p1727_p0)
}
  0x24   :  { %50 = dma.hbm_to_vmem [thread:$0]  %s1931_s3, 8192, %s45_s8, [#allocation5], %s1761_s28, %s1761_s28, %s1762_s29  }
  0x25   :  { %s1739_s13 = scalar_lea.vmem %s58_s2, 512  ;;  %p1744_p2 = scmp.lt.s32.totalorder %s58_s2, %s58_s2 }
  0x26   :  { %p1740_p1 = scmp.ne.s32.totalorder %s58_s2, %s1739_s13  ;;  %p1745_p3 = scmp.lt.s32.totalorder %s1739_s13, %s1739_s13 }
  0x28   :  { %p1746_p4 = por %p1745_p3, %p1744_p2 }
  0x2a   :  { %p1747_p5 = pnand %p1746_p4, %p1740_p1 }
  0x2c   :  { %1750 = shalt.err (!%p1747_p5)
}
  0x2d   :  { %60 = dma.hbm_to_vmem [thread:$0]  %s1932_s4, 512, %s58_s2, [#allocation8]  }
  0x2e   :  { %1751 = dma.done.wait [#allocation3], 5632  }
  0x2f   :  { %1752 = vsyncadd [#allocation3], 4294961664 }
  0x30   :  { %1753 = dma.done.wait [#allocation5], 49152  }
  0x31   :  { %1754 = vsyncadd [#allocation5], 4294918144 }
  0x32   :  { %1755 = dma.done.wait [#allocation8], 512  }
  0x33   :  { %1756 = vsyncadd [#allocation8], 4294966784  ;;  %v1765_v0 = vmov 0.0   ;;  %vm1766_vm0 = vmmov 0   ;;  %v89_v1 = vld [vmem:[#allocation2 + $0x78] sm:$0xff]  ;;  %v88_v2 = vld [vmem:[#allocation2 + $0x70] sm:$0xff] }
  0x34   :  { %1557 = vmatprep.subr.mxu0 %v1765_v0  ;;  %1589 = vmatprep.mubr.msk.f32.mxu0 %vm1766_vm0, %v1765_v0  ;;  %v87_v3 = vld [vmem:[#allocation2 + $0x68] sm:$0xff]  ;;  %v86_v4 = vld [vmem:[#allocation2 + $0x60] sm:$0xff]  ;;  %v177_v5 = vld [vmem:[#allocation2 + $0xf8] sm:$0xff]  ;;  %vm259_vm1 = vcmask 523264   ;;  %vm339_vm2 = vcmask 261120  }
  0x35   :  { %1592 = vmatprep.subr.mxu1 %v1765_v0  ;;  %1624 = vmatprep.mubr.msk.f32.mxu1 %vm1766_vm0, %v1765_v0  ;;  %v85_v6 = vld [vmem:[#allocation2 + $0x58] sm:$0xff]  ;;  %v176_v7 = vld [vmem:[#allocation2 + $0xf0] sm:$0xff]  ;;  %v175_v8 = vld [vmem:[#allocation2 + $0xe8] sm:$0xff] }
  0x36   :  { %1558 = vmatpush3.msra.mxu0 %v89_v1  ;;  %1593 = vmatpush3.msra.mxu1 %v177_v5  ;;  %v84_v9 = vld [vmem:[#allocation2 + $0x50] sm:$0xff]  ;;  %v174_v10 = vld [vmem:[#allocation2 + $0xe0] sm:$0xff]  ;;  %v83_v11 = vld [vmem:[#allocation2 + $0x48] sm:$0xff] }
  0x37   :  { %1559 = vmatprep.subr.mxu0 %v1765_v0  ;;  %1594 = vmatprep.subr.mxu1 %v1765_v0  ;;  %v173_v12 = vld [vmem:[#allocation2 + $0xd8] sm:$0xff]  ;;  %v82_v13 = vld [vmem:[#allocation2 + $0x40] sm:$0xff]  ;;  %v172_v14 = vld [vmem:[#allocation2 + $0xd0] sm:$0xff] }
  0x38   :  { %1560 = vmatpush3.msra.mxu0 %v88_v2  ;;  %1595 = vmatpush3.msra.mxu1 %v176_v7  ;;  %v81_v15 = vld [vmem:[#allocation2 + $0x38] sm:$0xff]  ;;  %v171_v16 = vld [vmem:[#allocation2 + $0xc8] sm:$0xff]  ;;  %v80_v17 = vld [vmem:[#allocation2 + $0x30] sm:$0xff] }
  0x39   :  { %1561 = vmatprep.subr.mxu0 %v1765_v0  ;;  %1596 = vmatprep.subr.mxu1 %v1765_v0  ;;  %v170_v18 = vld [vmem:[#allocation2 + $0xc0] sm:$0xff]  ;;  %v79_v19 = vld [vmem:[#allocation2 + $0x28] sm:$0xff]  ;;  %v169_v20 = vld [vmem:[#allocation2 + $0xb8] sm:$0xff] }
  0x3a   :  { %1562 = vmatpush3.msra.mxu0 %v87_v3  ;;  %1597 = vmatpush3.msra.mxu1 %v175_v8  ;;  %v78_v21 = vld [vmem:[#allocation2 + $0x20] sm:$0xff]  ;;  %v168_v22 = vld [vmem:[#allocation2 + $0xb0] sm:$0xff]  ;;  %v77_v23 = vld [vmem:[#allocation2 + $0x18] sm:$0xff] }
  0x3b   :  { %1563 = vmatprep.subr.mxu0 %v1765_v0  ;;  %1598 = vmatprep.subr.mxu1 %v1765_v0  ;;  %v167_v24 = vld [vmem:[#allocation2 + $0xa8] sm:$0xff]  ;;  %v76_v25 = vld [vmem:[#allocation2 + $0x10] sm:$0xff]  ;;  %v166_v26 = vld [vmem:[#allocation2 + $0xa0] sm:$0xff] }
  0x3c   :  { %1564 = vmatpush3.msra.mxu0 %v86_v4  ;;  %1599 = vmatpush3.msra.mxu1 %v174_v10  ;;  %v75_v27 = vld [vmem:[#allocation2 + $0x8] sm:$0xff]  ;;  %v165_v28 = vld [vmem:[#allocation2 + $0x98] sm:$0xff]  ;;  %v74_v29 = vld [vmem:[#allocation2] sm:$0xff] }
  0x3d   :  { %1565 = vmatprep.subr.mxu0 %v1765_v0  ;;  %1600 = vmatprep.subr.mxu1 %v1765_v0  ;;  %v1843_v30 = vld [vmem:[%s1928_s0] sm:$0x3]  ;;  %v164_v31 = vld [vmem:[#allocation2 + $0x90] sm:$0xff]  ;;  %v163_v32 = vld [vmem:[#allocation2 + $0x88] sm:$0xff] }
  0x3e   :  { %1566 = vmatpush3.msra.mxu0 %v85_v6  ;;  %1601 = vmatpush3.msra.mxu1 %v173_v12  ;;  %v162_v33 = vld [vmem:[#allocation2 + $0x80] sm:$0xff]  ;;  %v257_v34 = vld [vmem:[#allocation2 + $0x138] sm:$0xff]  ;;  %v256_v35 = vld [vmem:[#allocation2 + $0x130] sm:$0xff] }
  0x3f   :  { %1567 = vmatprep.subr.mxu0 %v1765_v0  ;;  %1602 = vmatprep.subr.mxu1 %v1765_v0  ;;  %v255_v36 = vld [vmem:[#allocation2 + $0x128] sm:$0xff]  ;;  %v254_v37 = vld [vmem:[#allocation2 + $0x120] sm:$0xff]  ;;  %v253_v38 = vld [vmem:[#allocation2 + $0x118] sm:$0xff] }
  0x40   :  { %1568 = vmatpush3.msra.mxu0 %v84_v9  ;;  %1603 = vmatpush3.msra.mxu1 %v172_v14  ;;  %v90_v39 = vld [vmem:[#allocation7] ss:$0 sm:$0xff]  ;;  %v252_v44 = vld [vmem:[#allocation2 + $0x110] sm:$0xff]  ;;  %v251_v45 = vld [vmem:[#allocation2 + $0x108] sm:$0xff] }
  0x41   :  { %1569 = vmatprep.subr.mxu0 %v1765_v0  ;;  %1604 = vmatprep.subr.mxu1 %v1765_v0  ;;  %v250_v46 = vld [vmem:[#allocation2 + $0x100] sm:$0xff]  ;;  %v476_v47 = vld [vmem:[#allocation4 + $0x1f8] sm:$0xff]  ;;  %v336_v49 = vld [vmem:[#allocation2 + $0x150] sm:$0xff] }
  0x42   :  { %1570 = vmatpush3.msra.mxu0 %v83_v11  ;;  %1605 = vmatpush3.msra.mxu1 %v171_v16  ;;  %v337_v48 = vld [vmem:[#allocation2 + $0x158] sm:$0xff]  ;;  %v178_v50 = vld [vmem:[#allocation7 + $0x1] ss:$0 sm:$0xff]  ;;  %v475_v55 = vld [vmem:[#allocation4 + $0x1f0] sm:$0xff] }
  0x43   :  { %1571 = vmatprep.subr.mxu0 %v1765_v0  ;;  %1606 = vmatprep.subr.mxu1 %v1765_v0  ;;  %v472_v56 = vld [vmem:[#allocation4 + $0x1d8] sm:$0xff]  ;;  %v471_v57 = vld [vmem:[#allocation4 + $0x1d0] sm:$0xff] }
  0x44   :  { %1572 = vmatpush3.msra.mxu0 %v82_v13  ;;  %1607 = vmatpush3.msra.mxu1 %v170_v18  ;;  %v468_v58 = vld [vmem:[#allocation4 + $0x1b8] sm:$0xff]  ;;  %v467_v59 = vld [vmem:[#allocation4 + $0x1b0] sm:$0xff] }
  0x45   :  { %1573 = vmatprep.subr.mxu0 %v1765_v0  ;;  %1608 = vmatprep.subr.mxu1 %v1765_v0  ;;  %v464_v60 = vld [vmem:[#allocation4 + $0x198] sm:$0xff]  ;;  %v463_v61 = vld [vmem:[#allocation4 + $0x190] sm:$0xff] }
  0x46   :  { %1574 = vmatpush3.msra.mxu0 %v81_v15  ;;  %1609 = vmatpush3.msra.mxu1 %v169_v20  ;;  %v460_v62 = vld [vmem:[#allocation4 + $0x178] sm:$0xff]  ;;  %v459_v63 = vld [vmem:[#allocation4 + $0x170] sm:$0xff] }
  0x47   :  { %1575 = vmatprep.subr.mxu0 %v1765_v0  ;;  %1610 = vmatprep.subr.mxu1 %v1765_v0  ;;  %v456_v1 = vld [vmem:[#allocation4 + $0x158] sm:$0xff]  ;;  %v455_v2 = vld [vmem:[#allocation4 + $0x150] sm:$0xff] }
  0x48   :  { %1576 = vmatpush3.msra.mxu0 %v80_v17  ;;  %1611 = vmatpush3.msra.mxu1 %v168_v22  ;;  %v452_v3 = vld [vmem:[#allocation4 + $0x138] sm:$0xff]  ;;  %v451_v4 = vld [vmem:[#allocation4 + $0x130] sm:$0xff] }
  0x49   :  { %1577 = vmatprep.subr.mxu0 %v1765_v0  ;;  %1612 = vmatprep.subr.mxu1 %v1765_v0  ;;  %v448_v5 = vld [vmem:[#allocation4 + $0x118] sm:$0xff]  ;;  %v447_v6 = vld [vmem:[#allocation4 + $0x110] sm:$0xff] }
  0x4a   :  { %1578 = vmatpush3.msra.mxu0 %v79_v19  ;;  %1613 = vmatpush3.msra.mxu1 %v167_v24  ;;  %v444_v7 = vld [vmem:[#allocation4 + $0xf8] sm:$0xff]  ;;  %v443_v8 = vld [vmem:[#allocation4 + $0xf0] sm:$0xff]  ;;  %v334_v24 = vld [vmem:[#allocation2 + $0x140] sm:$0xff] }
  0x4b   :  { %1579 = vmatprep.subr.mxu0 %v1765_v0  ;;  %1614 = vmatprep.subr.mxu1 %v1765_v0  ;;  %v440_v9 = vld [vmem:[#allocation4 + $0xd8] sm:$0xff]  ;;  %v439_v10 = vld [vmem:[#allocation4 + $0xd0] sm:$0xff] }
  0x4c   :  { %1580 = vmatpush3.msra.mxu0 %v78_v21  ;;  %1615 = vmatpush3.msra.mxu1 %v166_v26  ;;  %v436_v11 = vld [vmem:[#allocation4 + $0xb8] sm:$0xff]  ;;  %v435_v12 = vld [vmem:[#allocation4 + $0xb0] sm:$0xff]  ;;  %v835_v26 = vld [vmem:[#allocation4 + $0x7e8] sm:$0xff] }
  0x4d   :  { %1581 = vmatprep.subr.mxu0 %v1765_v0  ;;  %1616 = vmatprep.subr.mxu1 %v1765_v0  ;;  %v432_v13 = vld [vmem:[#allocation4 + $0x98] sm:$0xff]  ;;  %v431_v14 = vld [vmem:[#allocation4 + $0x90] sm:$0xff] }
  0x4e   :  { %1582 = vmatpush3.msra.mxu0 %v77_v23  ;;  %1617 = vmatpush3.msra.mxu1 %v165_v28  ;;  %v428_v15 = vld [vmem:[#allocation4 + $0x78] sm:$0xff]  ;;  %v427_v16 = vld [vmem:[#allocation4 + $0x70] sm:$0xff]  ;;  %v335_v23 = vld [vmem:[#allocation2 + $0x148] sm:$0xff] }
  0x4f   :  { %1583 = vmatprep.subr.mxu0 %v1765_v0  ;;  %1618 = vmatprep.subr.mxu1 %v1765_v0  ;;  %v424_v17 = vld [vmem:[#allocation4 + $0x58] sm:$0xff]  ;;  %v423_v18 = vld [vmem:[#allocation4 + $0x50] sm:$0xff]  ;;  %v831_v28 = vld [vmem:[#allocation4 + $0x7c8] sm:$0xff] }
  0x50   :  { %1584 = vmatpush3.msra.mxu0 %v76_v25  ;;  %1619 = vmatpush3.msra.mxu1 %v164_v31  ;;  %v420_v19 = vld [vmem:[#allocation4 + $0x38] sm:$0xff]  ;;  %v419_v20 = vld [vmem:[#allocation4 + $0x30] sm:$0xff]  ;;  %v474_v25 = vld [vmem:[#allocation4 + $0x1e8] sm:$0xff] }
  0x51   :  { %1585 = vmatprep.subr.mxu0 %v1765_v0  ;;  %1620 = vmatprep.subr.mxu1 %v1765_v0  ;;  %v416_v21 = vld [vmem:[#allocation4 + $0x18] sm:$0xff]  ;;  %v415_v22 = vld [vmem:[#allocation4 + $0x10] sm:$0xff]  ;;  %v827_v31 = vld [vmem:[#allocation4 + $0x7a8] sm:$0xff] }
  0x52   :  { %1586 = vmatpush3.msra.mxu0 %v75_v27  ;;  %1621 = vmatpush3.msra.mxu1 %v163_v32  ;;  %v834_v27 = vld [vmem:[#allocation4 + $0x7e0] sm:$0xff] }
  0x53   :  { %1587 = vmatprep.subr.mxu0 %v1765_v0  ;;  %1622 = vmatprep.subr.mxu1 %v1765_v0  ;;  %v826_v32 = vld [vmem:[#allocation4 + $0x7a0] sm:$0xff] }
  0x54   :  { %1588 = vmatpush3.msra.mxu0 %v74_v29  ;;  %1623 = vmatpush3.msra.mxu1 %v162_v33  ;;  %v830_v29 = vld [vmem:[#allocation4 + $0x7c0] sm:$0xff]  ;;  %v823_v33 = vld [vmem:[#allocation4 + $0x788] sm:$0xff] }
  0x55   :  { %1590 = vmatmul.mubr.f32.vlgmr.msra.gmra.mxu0 %v1843_v30  ;;  %1627 = vmatprep.subr.mxu0 %v1765_v0 }
  0x56   :  { %1643 = vmatprep.mubr.msk.f32.mxu0 %vm1766_vm0, %v1765_v0  ;;  %1646 = vmatprep.subr.mxu1 %v1765_v0 }
  0x57   :  { %1628 = vmatpush3.msra.mxu0 %v257_v34  ;;  %v822_v34 = vld [vmem:[#allocation4 + $0x780] sm:$0xff] }
  0x58   :  { %1629 = vmatprep.subr.mxu0 %v1765_v0 }
  0x59   :  { %1630 = vmatpush3.msra.mxu0 %v256_v35  ;;  %v819_v35 = vld [vmem:[#allocation4 + $0x768] sm:$0xff] }
  0x5a   :  { %1631 = vmatprep.subr.mxu0 %v1765_v0 }
  0x5b   :  { %1632 = vmatpush3.msra.mxu0 %v255_v36  ;;  %v818_v36 = vld [vmem:[#allocation4 + $0x760] sm:$0xff] }
  0x5c   :  { %1633 = vmatprep.subr.mxu0 %v1765_v0 }
  0x5d   :  { %1634 = vmatpush3.msra.mxu0 %v254_v37  ;;  %v815_v37 = vld [vmem:[#allocation4 + $0x748] sm:$0xff] }
  0x5e   :  { %1635 = vmatprep.subr.mxu0 %v1765_v0 }
  0x5f   :  { %1636 = vmatpush3.msra.mxu0 %v253_v38  ;;  %v814_v38 = vld [vmem:[#allocation4 + $0x740] sm:$0xff] }
  0x60   :  { %1637 = vmatprep.subr.mxu0 %v1765_v0 }
  0x61   :  { %1638 = vmatpush3.msra.mxu0 %v252_v44  ;;  %v802_v44 = vld [vmem:[#allocation4 + $0x6e0] sm:$0xff] }
  0x62   :  { %1639 = vmatprep.subr.mxu0 %v1765_v0 }
  0x63   :  { %1640 = vmatpush3.msra.mxu0 %v251_v45  ;;  %v799_v45 = vld [vmem:[#allocation4 + $0x6c8] sm:$0xff] }
  0x64   :  { %1641 = vmatprep.subr.mxu0 %v1765_v0 }
  0x65   :  { %1642 = vmatpush3.msra.mxu0 %v250_v46  ;;  %v798_v46 = vld [vmem:[#allocation4 + $0x6c0] sm:$0xff] }
  0x66   :  { %571 = vmatprep.subr.mxu0 %v476_v47  ;;  %v795_v47 = vld [vmem:[#allocation4 + $0x6a8] sm:$0xff] }
 0x115   :  { %v157_v40 = vpop.f32.mrf.mxu0 }
 0x116   :  { %v158_v41 = vadd.f32 %v157_v40, %v90_v39  ;;  %v811_v39 = vld [vmem:[#allocation4 + $0x728] sm:$0xff]  ;;  %v810_v40 = vld [vmem:[#allocation4 + $0x720] sm:$0xff] }
 0x117   :  { %v1591_v42 = vpop.f32.mrf.mxu0 }
 0x118   :  { %v161_v43 = vmax.f32 %v158_v41, 0.0  ;;  %v807_v41 = vld [vmem:[#allocation4 + $0x708] sm:$0xff]  ;;  %v806_v42 = vld [vmem:[#allocation4 + $0x700] sm:$0xff] }
 0x11a   :  { %1625 = vmatmul.mubr.f32.vlgmr.msra.gmra.mxu1 %v161_v43  ;;  %v803_v43 = vld [vmem:[#allocation4 + $0x6e8] sm:$0xff] }
 0x11b   :  { %1654 = vmatprep.mubr.msk.f32.mxu1 %vm1766_vm0, %v1765_v0  ;;  %1647 = vmatpush3.msra.mxu1 %v337_v48  ;;  %v794_v48 = vld [vmem:[#allocation4 + $0x6a0] sm:$0xff] }
 0x11c   :  { %1648 = vmatprep.subr.mxu1 %v1765_v0 }
 0x11d   :  { %1649 = vmatpush3.msra.mxu1 %v336_v49  ;;  %v791_v49 = vld [vmem:[#allocation4 + $0x688] sm:$0xff] }
 0x11e   :  { %1650 = vmatprep.subr.mxu1 %v1765_v0 }
 0x11f   :  { %1651 = vmatpush3.msra.mxu1 %v335_v23  ;;  %v846_v23 = vld [vmem:[#allocation4 + $0x840] sm:$0xff] }
 0x120   :  { %1652 = vmatprep.subr.mxu1 %v1765_v0 }
 0x121   :  { %1653 = vmatpush3.msra.mxu1 %v334_v24  ;;  %v843_v24 = vld [vmem:[#allocation4 + $0x828] sm:$0xff] }
 0x122   :  { %500 = vmatprep.subr.mxu1 %v474_v25  ;;  %v842_v25 = vld [vmem:[#allocation4 + $0x820] sm:$0xff] }
 0x1da   :  { %v245_v51 = vpop.f32.mrf.mxu1 }
 0x1db   :  { %v246_v52 = vadd.f32 %v245_v51, %v178_v50  ;;  %v790_v50 = vld [vmem:[#allocation4 + $0x680] sm:$0xff]  ;;  %v787_v51 = vld [vmem:[#allocation4 + $0x668] sm:$0xff] }
 0x1dc   :  { %v1626_v53 = vpop.f32.mrf.mxu1 }
 0x1dd   :  { %v249_v54 = vmax.f32 %v246_v52, 0.0  ;;  %v786_v52 = vld [vmem:[#allocation4 + $0x660] sm:$0xff]  ;;  %v783_v53 = vld [vmem:[#allocation4 + $0x648] sm:$0xff] }
 0x1df   :  { %1644 = vmatmul.mubr.msk.f32.vlgmr.msra.gmra.mxu0 %vm259_vm1, %v249_v54  ;;  %v782_v54 = vld [vmem:[#allocation4 + $0x640] sm:$0xff] }
 0x1e0   :  { %572 = vmatpush1.msra.mxu0 %v475_v55  ;;  %635 = vmatprep.mubr.f32.mxu0 %v1765_v0  ;;  %v779_v55 = vld [vmem:[#allocation4 + $0x628] sm:$0xff] }
 0x1e1   :  { %573 = vmatprep.subr.mxu0 %v472_v56  ;;  %v778_v56 = vld [vmem:[#allocation4 + $0x620] sm:$0xff] }
 0x1e2   :  { %574 = vmatpush1.msra.mxu0 %v471_v57  ;;  %v775_v57 = vld [vmem:[#allocation4 + $0x608] sm:$0xff] }
 0x1e3   :  { %575 = vmatprep.subr.mxu0 %v468_v58  ;;  %v774_v58 = vld [vmem:[#allocation4 + $0x600] sm:$0xff] }
 0x1e4   :  { %576 = vmatpush1.msra.mxu0 %v467_v59  ;;  %v899_v59 = vld [vmem:[#allocation4 + $0x9e8] sm:$0xff] }
 0x1e5   :  { %577 = vmatprep.subr.mxu0 %v464_v60  ;;  %v898_v60 = vld [vmem:[#allocation4 + $0x9e0] sm:$0xff] }
 0x1e6   :  { %578 = vmatpush1.msra.mxu0 %v463_v61  ;;  %v895_v61 = vld [vmem:[#allocation4 + $0x9c8] sm:$0xff] }
 0x1e7   :  { %579 = vmatprep.subr.mxu0 %v460_v62  ;;  %v894_v62 = vld [vmem:[#allocation4 + $0x9c0] sm:$0xff] }
 0x1e8   :  { %580 = vmatpush1.msra.mxu0 %v459_v63  ;;  %v891_v63 = vld [vmem:[#allocation4 + $0x9a8] sm:$0xff] }
 0x1e9   :  { %581 = vmatprep.subr.mxu0 %v456_v1  ;;  %v890_v1 = vld [vmem:[#allocation4 + $0x9a0] sm:$0xff] }
 0x1ea   :  { %582 = vmatpush1.msra.mxu0 %v455_v2  ;;  %v887_v2 = vld [vmem:[#allocation4 + $0x988] sm:$0xff] }
 0x1eb   :  { %583 = vmatprep.subr.mxu0 %v452_v3  ;;  %v886_v3 = vld [vmem:[#allocation4 + $0x980] sm:$0xff] }
 0x1ec   :  { %584 = vmatpush1.msra.mxu0 %v451_v4  ;;  %v883_v4 = vld [vmem:[#allocation4 + $0x968] sm:$0xff] }
 0x1ed   :  { %585 = vmatprep.subr.mxu0 %v448_v5  ;;  %v882_v5 = vld [vmem:[#allocation4 + $0x960] sm:$0xff] }
 0x1ee   :  { %586 = vmatpush1.msra.mxu0 %v447_v6  ;;  %v879_v6 = vld [vmem:[#allocation4 + $0x948] sm:$0xff] }
 0x1ef   :  { %587 = vmatprep.subr.mxu0 %v444_v7  ;;  %v878_v7 = vld [vmem:[#allocation4 + $0x940] sm:$0xff] }
 0x1f0   :  { %588 = vmatpush1.msra.mxu0 %v443_v8  ;;  %v875_v8 = vld [vmem:[#allocation4 + $0x928] sm:$0xff] }
 0x1f1   :  { %589 = vmatprep.subr.mxu0 %v440_v9  ;;  %v874_v9 = vld [vmem:[#allocation4 + $0x920] sm:$0xff] }
 0x1f2   :  { %590 = vmatpush1.msra.mxu0 %v439_v10  ;;  %v871_v10 = vld [vmem:[#allocation4 + $0x908] sm:$0xff] }
 0x1f3   :  { %591 = vmatprep.subr.mxu0 %v436_v11  ;;  %v870_v11 = vld [vmem:[#allocation4 + $0x900] sm:$0xff] }
 0x1f4   :  { %592 = vmatpush1.msra.mxu0 %v435_v12  ;;  %v867_v12 = vld [vmem:[#allocation4 + $0x8e8] sm:$0xff] }
 0x1f5   :  { %593 = vmatprep.subr.mxu0 %v432_v13  ;;  %v866_v13 = vld [vmem:[#allocation4 + $0x8e0] sm:$0xff] }
 0x1f6   :  { %594 = vmatpush1.msra.mxu0 %v431_v14  ;;  %v863_v14 = vld [vmem:[#allocation4 + $0x8c8] sm:$0xff] }
 0x1f7   :  { %595 = vmatprep.subr.mxu0 %v428_v15  ;;  %v862_v15 = vld [vmem:[#allocation4 + $0x8c0] sm:$0xff] }
 0x1f8   :  { %596 = vmatpush1.msra.mxu0 %v427_v16  ;;  %v859_v16 = vld [vmem:[#allocation4 + $0x8a8] sm:$0xff] }
 0x1f9   :  { %597 = vmatprep.subr.mxu0 %v424_v17  ;;  %v858_v17 = vld [vmem:[#allocation4 + $0x8a0] sm:$0xff] }
 0x1fa   :  { %598 = vmatpush1.msra.mxu0 %v423_v18  ;;  %v855_v18 = vld [vmem:[#allocation4 + $0x888] sm:$0xff] }
 0x1fb   :  { %599 = vmatprep.subr.mxu0 %v420_v19  ;;  %v854_v19 = vld [vmem:[#allocation4 + $0x880] sm:$0xff] }
 0x1fc   :  { %600 = vmatpush1.msra.mxu0 %v419_v20  ;;  %v851_v20 = vld [vmem:[#allocation4 + $0x868] sm:$0xff] }
 0x1fd   :  { %601 = vmatprep.subr.mxu0 %v416_v21  ;;  %v850_v21 = vld [vmem:[#allocation4 + $0x860] sm:$0xff] }
 0x1fe   :  { %602 = vmatpush1.msra.mxu0 %v415_v22  ;;  %v847_v22 = vld [vmem:[#allocation4 + $0x848] sm:$0xff] }
 0x1ff   :  { %636 = vmatmul.mubr.f32.vlgmr.msra.gmra.mxu0 %v1843_v30  ;;  %996 = vmatprep.subr.mxu0 %v835_v26  ;;  %v839_v26 = vld [vmem:[#allocation4 + $0x808] sm:$0xff] }
 0x200   :  { %997 = vmatpush1.msra.mxu0 %v834_v27  ;;  %v838_v27 = vld [vmem:[#allocation4 + $0x800] sm:$0xff] }
 0x201   :  { %998 = vmatprep.subr.mxu0 %v831_v28  ;;  %v837_v28 = vld [vmem:[#allocation4 + $0x7f8] sm:$0xff] }
 0x202   :  { %999 = vmatpush1.msra.mxu0 %v830_v29  ;;  %v258_v29 = vld [vmem:[#allocation7 + $0x2] ss:$0 sm:$0xff] }
 0x203   :  { %1000 = vmatprep.subr.mxu0 %v827_v31 }
 0x204   :  { %1001 = vmatpush1.msra.mxu0 %v826_v32 }
 0x205   :  { %1002 = vmatprep.subr.mxu0 %v823_v33 }
 0x206   :  { %1003 = vmatpush1.msra.mxu0 %v822_v34 }
 0x207   :  { %1004 = vmatprep.subr.mxu0 %v819_v35  ;;  %v473_v35 = vld [vmem:[#allocation4 + $0x1e0] sm:$0xff] }
 0x208   :  { %1005 = vmatpush1.msra.mxu0 %v818_v36  ;;  %v470_v36 = vld [vmem:[#allocation4 + $0x1c8] sm:$0xff] }
 0x209   :  { %1006 = vmatprep.subr.mxu0 %v815_v37  ;;  %v469_v37 = vld [vmem:[#allocation4 + $0x1c0] sm:$0xff] }
 0x20a   :  { %1007 = vmatpush1.msra.mxu0 %v814_v38  ;;  %v466_v38 = vld [vmem:[#allocation4 + $0x1a8] sm:$0xff] }
 0x20b   :  { %1008 = vmatprep.subr.mxu0 %v811_v39  ;;  %v465_v39 = vld [vmem:[#allocation4 + $0x1a0] sm:$0xff] }
 0x20c   :  { %1009 = vmatpush1.msra.mxu0 %v810_v40  ;;  %v462_v40 = vld [vmem:[#allocation4 + $0x188] sm:$0xff] }
 0x20d   :  { %1010 = vmatprep.subr.mxu0 %v807_v41  ;;  %v461_v41 = vld [vmem:[#allocation4 + $0x180] sm:$0xff] }
 0x20e   :  { %1011 = vmatpush1.msra.mxu0 %v806_v42  ;;  %v458_v42 = vld [vmem:[#allocation4 + $0x168] sm:$0xff] }
 0x20f   :  { %1012 = vmatprep.subr.mxu0 %v803_v43  ;;  %v457_v43 = vld [vmem:[#allocation4 + $0x160] sm:$0xff] }
 0x210   :  { %1013 = vmatpush1.msra.mxu0 %v802_v44  ;;  %v454_v44 = vld [vmem:[#allocation4 + $0x148] sm:$0xff] }
 0x211   :  { %1014 = vmatprep.subr.mxu0 %v799_v45  ;;  %v453_v45 = vld [vmem:[#allocation4 + $0x140] sm:$0xff] }
 0x212   :  { %1015 = vmatpush1.msra.mxu0 %v798_v46  ;;  %v450_v46 = vld [vmem:[#allocation4 + $0x128] sm:$0xff] }
 0x213   :  { %1016 = vmatprep.subr.mxu0 %v795_v47  ;;  %v449_v47 = vld [vmem:[#allocation4 + $0x120] sm:$0xff] }
 0x214   :  { %1017 = vmatpush1.msra.mxu0 %v794_v48  ;;  %v445_v48 = vld [vmem:[#allocation4 + $0x100] sm:$0xff] }
 0x215   :  { %1018 = vmatprep.subr.mxu0 %v791_v49  ;;  %v480_v49 = vlaneseq }
 0x216   :  { %1019 = vmatpush1.msra.mxu0 %v790_v50  ;;  %v442_v50 = vld [vmem:[#allocation4 + $0xe8] sm:$0xff] }
 0x217   :  { %1020 = vmatprep.subr.mxu0 %v787_v51  ;;  %v441_v51 = vld [vmem:[#allocation4 + $0xe0] sm:$0xff] }
 0x218   :  { %1021 = vmatpush1.msra.mxu0 %v786_v52  ;;  %v438_v52 = vld [vmem:[#allocation4 + $0xc8] sm:$0xff] }
 0x219   :  { %1022 = vmatprep.subr.mxu0 %v783_v53  ;;  %v437_v53 = vld [vmem:[#allocation4 + $0xc0] sm:$0xff] }
 0x21a   :  { %1023 = vmatpush1.msra.mxu0 %v782_v54  ;;  %v1871_v54 = vshrl.u32 %v480_v49, 7 }
 0x21b   :  { %1024 = vmatprep.subr.mxu0 %v779_v55  ;;  %v434_v55 = vld [vmem:[#allocation4 + $0xa8] sm:$0xff] }
 0x21c   :  { %1025 = vmatpush1.msra.mxu0 %v778_v56  ;;  %v433_v56 = vld [vmem:[#allocation4 + $0xa0] sm:$0xff] }
 0x21d   :  { %1026 = vmatprep.subr.mxu0 %v775_v57  ;;  %v430_v57 = vld [vmem:[#allocation4 + $0x88] sm:$0xff] }
 0x21e   :  { %1027 = vmatpush1.msra.mxu0 %v774_v58  ;;  %v429_v58 = vld [vmem:[#allocation4 + $0x80] sm:$0xff] }
 0x21f   :  { %1028 = vmatprep.subr.mxu0 %v899_v59  ;;  %v490_v59 = vsub.s32 2, %v1871_v54 }
 0x220   :  { %1029 = vmatpush2.msra.mxu0 %v898_v60  ;;  %v426_v60 = vld [vmem:[#allocation4 + $0x68] sm:$0xff] }
 0x221   :  { %1030 = vmatprep.subr.mxu0 %v895_v61  ;;  %v1874_v61 = vld [vmem:[#allocation7 + $0x4] ss:$8 sm:$0xf] }
 0x222   :  { %1031 = vmatpush2.msra.mxu0 %v894_v62  ;;  %v425_v62 = vld [vmem:[#allocation4 + $0x60] sm:$0xff] }
 0x223   :  { %1032 = vmatprep.subr.mxu0 %v891_v63  ;;  %v494_v63 = vsub.s32 3, %v1871_v54 }
 0x224   :  { %1033 = vmatpush2.msra.mxu0 %v890_v1  ;;  %v422_v1 = vld [vmem:[#allocation4 + $0x48] sm:$0xff] }
 0x225   :  { %1034 = vmatprep.subr.mxu0 %v887_v2  ;;  %v421_v2 = vld [vmem:[#allocation4 + $0x40] sm:$0xff] }
 0x226   :  { %1035 = vmatpush2.msra.mxu0 %v886_v3  ;;  %v491_v3 = vrot.slane %v1874_v61, %v490_v59 }
 0x227   :  { %1036 = vmatprep.subr.mxu0 %v883_v4  ;;  %v418_v4 = vld [vmem:[#allocation4 + $0x28] sm:$0xff] }
 0x228   :  { %1037 = vmatpush2.msra.mxu0 %v882_v5  ;;  %v417_v5 = vld [vmem:[#allocation4 + $0x20] sm:$0xff] }
 0x229   :  { %1038 = vmatprep.subr.mxu0 %v879_v6  ;;  %v495_v6 = vrot.slane %v1874_v61, %v494_v63 }
 0x22a   :  { %1039 = vmatpush2.msra.mxu0 %v878_v7  ;;  %v414_v7 = vld [vmem:[#allocation4 + $0x8] sm:$0xff] }
 0x22b   :  { %1040 = vmatprep.subr.mxu0 %v875_v8 }
 0x22c   :  { %1041 = vmatpush2.msra.mxu0 %v874_v9  ;;  %v413_v9 = vld [vmem:[#allocation4] sm:$0xff] }
 0x22d   :  { %1042 = vmatprep.subr.mxu0 %v871_v10 }
 0x22e   :  { %1043 = vmatpush2.msra.mxu0 %v870_v11 }
 0x22f   :  { %1044 = vmatprep.subr.mxu0 %v867_v12  ;;  %v707_v12 = vld [vmem:[#allocation4 + $0x3e8] sm:$0xff] }
 0x230   :  { %1045 = vmatpush2.msra.mxu0 %v866_v13 }
 0x231   :  { %1046 = vmatprep.subr.mxu0 %v863_v14  ;;  %v706_v14 = vld [vmem:[#allocation4 + $0x3e0] sm:$0xff] }
 0x232   :  { %1047 = vmatpush2.msra.mxu0 %v862_v15 }
 0x233   :  { %1048 = vmatprep.subr.mxu0 %v859_v16  ;;  %v703_v16 = vld [vmem:[#allocation4 + $0x3c8] sm:$0xff] }
 0x234   :  { %1049 = vmatpush2.msra.mxu0 %v858_v17 }
 0x235   :  { %1050 = vmatprep.subr.mxu0 %v855_v18  ;;  %v702_v18 = vld [vmem:[#allocation4 + $0x3c0] sm:$0xff] }
 0x236   :  { %1051 = vmatpush2.msra.mxu0 %v854_v19  ;;  %v836_v19 = vld [vmem:[#allocation4 + $0x7f0] sm:$0xff] }
 0x237   :  { %1052 = vmatprep.subr.mxu0 %v851_v20  ;;  %v699_v20 = vld [vmem:[#allocation4 + $0x3a8] sm:$0xff] }
 0x238   :  { %1053 = vmatpush2.msra.mxu0 %v850_v21  ;;  %v833_v21 = vld [vmem:[#allocation4 + $0x7d8] sm:$0xff] }
 0x239   :  { %1054 = vmatprep.subr.mxu0 %v847_v22  ;;  %v698_v22 = vld [vmem:[#allocation4 + $0x3a0] sm:$0xff] }
 0x23a   :  { %1055 = vmatpush2.msra.mxu0 %v846_v23  ;;  %v832_v23 = vld [vmem:[#allocation4 + $0x7d0] sm:$0xff] }
 0x23b   :  { %1056 = vmatprep.subr.mxu0 %v843_v24  ;;  %v695_v24 = vld [vmem:[#allocation4 + $0x388] sm:$0xff] }
 0x23c   :  { %1057 = vmatpush2.msra.mxu0 %v842_v25  ;;  %v694_v25 = vld [vmem:[#allocation4 + $0x380] sm:$0xff] }
 0x23d   :  { %1058 = vmatprep.subr.mxu0 %v839_v26  ;;  %v828_v26 = vld [vmem:[#allocation4 + $0x7b0] sm:$0xff] }
 0x23e   :  { %1059 = vmatpush2.msra.mxu0 %v838_v27  ;;  %v691_v27 = vld [vmem:[#allocation4 + $0x368] sm:$0xff] }
 0x23f   :  { %1138 = vmatprep.subr.mxu0 %v837_v28  ;;  %v825_v28 = vld [vmem:[#allocation4 + $0x798] sm:$0xff] }
 0x29f   :  { %v329_v31 = vpop.f32.mrf.mxu0 }
 0x2a0   :  { %v330_v32 = vadd.f32 %v329_v31, %v258_v29  ;;  %v690_v29 = vld [vmem:[#allocation4 + $0x360] sm:$0xff]  ;;  %v824_v31 = vld [vmem:[#allocation4 + $0x790] sm:$0xff] }
 0x2a1   :  { %v1645_v33 = vpop.f32.mrf.mxu0 }
 0x2a2   :  { %v333_v34 = vmax.f32 %v330_v32, 0.0  ;;  %v687_v32 = vld [vmem:[#allocation4 + $0x348] sm:$0xff]  ;;  %v821_v33 = vld [vmem:[#allocation4 + $0x778] sm:$0xff] }
 0x2a4   :  { %1655 = vmatmul.mubr.msk.f32.vlgmr.msra.gmra.mxu1 %vm339_vm2, %v333_v34  ;;  %v686_v34 = vld [vmem:[#allocation4 + $0x340] sm:$0xff] }
 0x2a5   :  { %501 = vmatpush1.msra.mxu1 %v473_v35  ;;  %564 = vmatprep.mubr.f32.mxu1 %v1765_v0  ;;  %v446_v0 = vld [vmem:[#allocation4 + $0x108] sm:$0xff]  ;;  %v820_v35 = vld [vmem:[#allocation4 + $0x770] sm:$0xff] }
 0x2a6   :  { %502 = vmatprep.subr.mxu1 %v470_v36  ;;  %v683_v36 = vld [vmem:[#allocation4 + $0x328] sm:$0xff] }
 0x2a7   :  { %503 = vmatpush1.msra.mxu1 %v469_v37  ;;  %v817_v37 = vld [vmem:[#allocation4 + $0x758] sm:$0xff] }
 0x2a8   :  { %504 = vmatprep.subr.mxu1 %v466_v38  ;;  %v682_v38 = vld [vmem:[#allocation4 + $0x320] sm:$0xff] }
 0x2a9   :  { %505 = vmatpush1.msra.mxu1 %v465_v39  ;;  %v816_v39 = vld [vmem:[#allocation4 + $0x750] sm:$0xff] }
 0x2aa   :  { %506 = vmatprep.subr.mxu1 %v462_v40  ;;  %v679_v40 = vld [vmem:[#allocation4 + $0x308] sm:$0xff] }
 0x2ab   :  { %507 = vmatpush1.msra.mxu1 %v461_v41  ;;  %v813_v41 = vld [vmem:[#allocation4 + $0x738] sm:$0xff] }
 0x2ac   :  { %508 = vmatprep.subr.mxu1 %v458_v42  ;;  %v678_v42 = vld [vmem:[#allocation4 + $0x300] sm:$0xff] }
 0x2ad   :  { %509 = vmatpush1.msra.mxu1 %v457_v43  ;;  %v812_v43 = vld [vmem:[#allocation4 + $0x730] sm:$0xff] }
 0x2ae   :  { %510 = vmatprep.subr.mxu1 %v454_v44  ;;  %v675_v44 = vld [vmem:[#allocation4 + $0x2e8] sm:$0xff] }
 0x2af   :  { %511 = vmatpush1.msra.mxu1 %v453_v45  ;;  %v809_v45 = vld [vmem:[#allocation4 + $0x718] sm:$0xff] }
 0x2b0   :  { %512 = vmatprep.subr.mxu1 %v450_v46  ;;  %v674_v46 = vld [vmem:[#allocation4 + $0x2e0] sm:$0xff] }
 0x2b1   :  { %513 = vmatpush1.msra.mxu1 %v449_v47  ;;  %v808_v47 = vld [vmem:[#allocation4 + $0x710] sm:$0xff] }
 0x2b2   :  { %514 = vmatprep.subr.mxu1 %v446_v0  ;;  %v671_v0 = vld [vmem:[#allocation4 + $0x2c8] sm:$0xff] }
 0x2b3   :  { %515 = vmatpush1.msra.mxu1 %v445_v48  ;;  %v805_v48 = vld [vmem:[#allocation4 + $0x6f8] sm:$0xff] }
 0x2b4   :  { %516 = vmatprep.subr.mxu1 %v442_v50  ;;  %v670_v50 = vld [vmem:[#allocation4 + $0x2c0] sm:$0xff] }
 0x2b5   :  { %517 = vmatpush1.msra.mxu1 %v441_v51  ;;  %v804_v51 = vld [vmem:[#allocation4 + $0x6f0] sm:$0xff] }
 0x2b6   :  { %518 = vmatprep.subr.mxu1 %v438_v52  ;;  %v667_v52 = vld [vmem:[#allocation4 + $0x2a8] sm:$0xff] }
 0x2b7   :  { %519 = vmatpush1.msra.mxu1 %v437_v53  ;;  %v801_v53 = vld [vmem:[#allocation4 + $0x6d8] sm:$0xff] }
 0x2b8   :  { %520 = vmatprep.subr.mxu1 %v434_v55  ;;  %v666_v55 = vld [vmem:[#allocation4 + $0x2a0] sm:$0xff] }
 0x2b9   :  { %521 = vmatpush1.msra.mxu1 %v433_v56  ;;  %v800_v56 = vld [vmem:[#allocation4 + $0x6d0] sm:$0xff] }
 0x2ba   :  { %522 = vmatprep.subr.mxu1 %v430_v57  ;;  %v663_v57 = vld [vmem:[#allocation4 + $0x288] sm:$0xff] }
 0x2bb   :  { %523 = vmatpush1.msra.mxu1 %v429_v58  ;;  %v797_v58 = vld [vmem:[#allocation4 + $0x6b8] sm:$0xff] }
 0x2bc   :  { %524 = vmatprep.subr.mxu1 %v426_v60  ;;  %v662_v60 = vld [vmem:[#allocation4 + $0x280] sm:$0xff] }
 0x2bd   :  { %525 = vmatpush1.msra.mxu1 %v425_v62  ;;  %v796_v62 = vld [vmem:[#allocation4 + $0x6b0] sm:$0xff] }
 0x2be   :  { %526 = vmatprep.subr.mxu1 %v422_v1  ;;  %v659_v1 = vld [vmem:[#allocation4 + $0x268] sm:$0xff] }
 0x2bf   :  { %527 = vmatpush1.msra.mxu1 %v421_v2  ;;  %v637_v8 = vpop.f32.mrf.mxu0  ;;  %v793_v2 = vld [vmem:[#allocation4 + $0x698] sm:$0xff] }
 0x2c0   :  { %528 = vmatprep.subr.mxu1 %v418_v4  ;;  %v1883_v10 = vadd.f32 %v637_v8, %v491_v3  ;;  %v658_v3 = vld [vmem:[#allocation4 + $0x260] sm:$0xff]  ;;  %v792_v4 = vld [vmem:[#allocation4 + $0x690] sm:$0xff] }
 0x2c1   :  { %529 = vmatpush1.msra.mxu1 %v417_v5  ;;  %v639_v11 = vpop.f32.mrf.mxu0  ;;  %v789_v5 = vld [vmem:[#allocation4 + $0x678] sm:$0xff]  ;;  %v784_v8 = vld [vmem:[#allocation4 + $0x650] sm:$0xff] }
 0x2c2   :  { %530 = vmatprep.subr.mxu1 %v414_v7  ;;  %v1885_v13 = vadd.f32 %v639_v11, %v495_v6  ;;  %v644_v15 = vmax.f32 %v1883_v10, 0.0  ;;  %v788_v6 = vld [vmem:[#allocation4 + $0x670] sm:$0xff]  ;;  %v785_v7 = vld [vmem:[#allocation4 + $0x658] sm:$0xff] }
 0x2c3   :  { %531 = vmatpush1.msra.mxu1 %v413_v9  ;;  %v655_v9 = vld [vmem:[#allocation4 + $0x248] sm:$0xff]  ;;  %v781_v11 = vld [vmem:[#allocation4 + $0x638] sm:$0xff] }
 0x2c4   :  { %565 = vmatmul.mubr.f32.vlgmr.msra.gmra.mxu1 %v1843_v30  ;;  %v645_v17 = vmax.f32 %v1885_v13, 0.0  ;;  %925 = vmatprep.subr.mxu1 %v707_v12  ;;  %v829_v30 = vld [vmem:[#allocation4 + $0x7b8] sm:$0xff]  ;;  %v654_v12 = vld [vmem:[#allocation4 + $0x240] sm:$0xff]  ;;  %v776_v13 = vld [vmem:[#allocation4 + $0x610] sm:$0xff] }
 0x2c5   :  { %926 = vmatpush1.msra.mxu1 %v706_v14  ;;  %v780_v14 = vld [vmem:[#allocation4 + $0x630] sm:$0xff] }
 0x2c6   :  { %1060 = vmatprep.mubr.f32.mxu0 %v645_v17  ;;  %927 = vmatprep.subr.mxu1 %v703_v16  ;;  %v651_v16 = vld [vmem:[#allocation4 + $0x228] sm:$0xff] }
 0x2c7   :  { %1061 = vmatmul.mubr.f32.vlgmr.msra.gmra.mxu0 %v644_v15  ;;  %928 = vmatpush1.msra.mxu1 %v702_v18  ;;  %v777_v18 = vld [vmem:[#allocation4 + $0x618] sm:$0xff] }
 0x2c8   :  { %1139 = vmatpush1.msra.mxu0 %v836_v19  ;;  %929 = vmatprep.subr.mxu1 %v699_v20  ;;  %v650_v19 = vld [vmem:[#allocation4 + $0x220] sm:$0xff]  ;;  %v901_v20 = vld [vmem:[#allocation4 + $0x9f8] sm:$0xff] }
 0x2c9   :  { %1140 = vmatprep.subr.mxu0 %v833_v21  ;;  %930 = vmatpush1.msra.mxu1 %v698_v22  ;;  %v646_v21 = vld [vmem:[#allocation4 + $0x200] sm:$0xff]  ;;  %v900_v22 = vld [vmem:[#allocation4 + $0x9f0] sm:$0xff] }
 0x2ca   :  { %1141 = vmatpush1.msra.mxu0 %v832_v23  ;;  %931 = vmatprep.subr.mxu1 %v695_v24  ;;  %v771_v23 = vld [vmem:[#allocation4 + $0x5e8] sm:$0xff]  ;;  %v897_v24 = vld [vmem:[#allocation4 + $0x9d8] sm:$0xff] }
 0x2cb   :  { %1142 = vmatprep.subr.mxu0 %v829_v30  ;;  %932 = vmatpush1.msra.mxu1 %v694_v25  ;;  %v770_v30 = vld [vmem:[#allocation4 + $0x5e0] sm:$0xff]  ;;  %v896_v25 = vld [vmem:[#allocation4 + $0x9d0] sm:$0xff] }
 0x2cc   :  { %1143 = vmatpush1.msra.mxu0 %v828_v26  ;;  %933 = vmatprep.subr.mxu1 %v691_v27  ;;  %v767_v26 = vld [vmem:[#allocation4 + $0x5c8] sm:$0xff]  ;;  %v893_v27 = vld [vmem:[#allocation4 + $0x9b8] sm:$0xff] }
 0x2cd   :  { %1144 = vmatprep.subr.mxu0 %v825_v28  ;;  %934 = vmatpush1.msra.mxu1 %v690_v29  ;;  %v766_v28 = vld [vmem:[#allocation4 + $0x5c0] sm:$0xff]  ;;  %v892_v29 = vld [vmem:[#allocation4 + $0x9b0] sm:$0xff] }
 0x2ce   :  { %1145 = vmatpush1.msra.mxu0 %v824_v31  ;;  %935 = vmatprep.subr.mxu1 %v687_v32  ;;  %v763_v31 = vld [vmem:[#allocation4 + $0x5a8] sm:$0xff]  ;;  %v889_v32 = vld [vmem:[#allocation4 + $0x998] sm:$0xff] }
 0x2cf   :  { %1146 = vmatprep.subr.mxu0 %v821_v33  ;;  %936 = vmatpush1.msra.mxu1 %v686_v34  ;;  %v762_v33 = vld [vmem:[#allocation4 + $0x5a0] sm:$0xff]  ;;  %v888_v34 = vld [vmem:[#allocation4 + $0x990] sm:$0xff] }
 0x2d0   :  { %1147 = vmatpush1.msra.mxu0 %v820_v35  ;;  %937 = vmatprep.subr.mxu1 %v683_v36  ;;  %v759_v35 = vld [vmem:[#allocation4 + $0x588] sm:$0xff]  ;;  %v885_v36 = vld [vmem:[#allocation4 + $0x978] sm:$0xff] }
 0x2d1   :  { %1148 = vmatprep.subr.mxu0 %v817_v37  ;;  %938 = vmatpush1.msra.mxu1 %v682_v38  ;;  %v758_v37 = vld [vmem:[#allocation4 + $0x580] sm:$0xff]  ;;  %v884_v38 = vld [vmem:[#allocation4 + $0x970] sm:$0xff] }
 0x2d2   :  { %1149 = vmatpush1.msra.mxu0 %v816_v39  ;;  %939 = vmatprep.subr.mxu1 %v679_v40  ;;  %v755_v39 = vld [vmem:[#allocation4 + $0x568] sm:$0xff]  ;;  %v881_v40 = vld [vmem:[#allocation4 + $0x958] sm:$0xff] }
 0x2d3   :  { %1150 = vmatprep.subr.mxu0 %v813_v41  ;;  %940 = vmatpush1.msra.mxu1 %v678_v42  ;;  %v754_v41 = vld [vmem:[#allocation4 + $0x560] sm:$0xff]  ;;  %v880_v42 = vld [vmem:[#allocation4 + $0x950] sm:$0xff] }
 0x2d4   :  { %1151 = vmatpush1.msra.mxu0 %v812_v43  ;;  %941 = vmatprep.subr.mxu1 %v675_v44  ;;  %v751_v43 = vld [vmem:[#allocation4 + $0x548] sm:$0xff]  ;;  %v877_v44 = vld [vmem:[#allocation4 + $0x938] sm:$0xff] }
 0x2d5   :  { %1152 = vmatprep.subr.mxu0 %v809_v45  ;;  %942 = vmatpush1.msra.mxu1 %v674_v46  ;;  %v750_v45 = vld [vmem:[#allocation4 + $0x540] sm:$0xff]  ;;  %v876_v46 = vld [vmem:[#allocation4 + $0x930] sm:$0xff] }
 0x2d6   :  { %1153 = vmatpush1.msra.mxu0 %v808_v47  ;;  %943 = vmatprep.subr.mxu1 %v671_v0  ;;  %v747_v47 = vld [vmem:[#allocation4 + $0x528] sm:$0xff]  ;;  %v873_v0 = vld [vmem:[#allocation4 + $0x918] sm:$0xff] }
 0x2d7   :  { %1154 = vmatprep.subr.mxu0 %v805_v48  ;;  %944 = vmatpush1.msra.mxu1 %v670_v50  ;;  %v746_v48 = vld [vmem:[#allocation4 + $0x520] sm:$0xff]  ;;  %v872_v50 = vld [vmem:[#allocation4 + $0x910] sm:$0xff] }
 0x2d8   :  { %1155 = vmatpush1.msra.mxu0 %v804_v51  ;;  %945 = vmatprep.subr.mxu1 %v667_v52  ;;  %v743_v51 = vld [vmem:[#allocation4 + $0x508] sm:$0xff]  ;;  %v869_v52 = vld [vmem:[#allocation4 + $0x8f8] sm:$0xff] }
 0x2d9   :  { %1156 = vmatprep.subr.mxu0 %v801_v53  ;;  %946 = vmatpush1.msra.mxu1 %v666_v55  ;;  %v742_v53 = vld [vmem:[#allocation4 + $0x500] sm:$0xff]  ;;  %v868_v55 = vld [vmem:[#allocation4 + $0x8f0] sm:$0xff] }
 0x2da   :  { %1157 = vmatpush1.msra.mxu0 %v800_v56  ;;  %947 = vmatprep.subr.mxu1 %v663_v57  ;;  %v739_v56 = vld [vmem:[#allocation4 + $0x4e8] sm:$0xff]  ;;  %v865_v57 = vld [vmem:[#allocation4 + $0x8d8] sm:$0xff] }
 0x2db   :  { %1158 = vmatprep.subr.mxu0 %v797_v58  ;;  %948 = vmatpush1.msra.mxu1 %v662_v60  ;;  %v738_v58 = vld [vmem:[#allocation4 + $0x4e0] sm:$0xff]  ;;  %v864_v60 = vld [vmem:[#allocation4 + $0x8d0] sm:$0xff] }
 0x2dc   :  { %1159 = vmatpush1.msra.mxu0 %v796_v62  ;;  %949 = vmatprep.subr.mxu1 %v659_v1  ;;  %v735_v62 = vld [vmem:[#allocation4 + $0x4c8] sm:$0xff]  ;;  %v861_v1 = vld [vmem:[#allocation4 + $0x8b8] sm:$0xff] }
 0x2dd   :  { %1160 = vmatprep.subr.mxu0 %v793_v2  ;;  %950 = vmatpush1.msra.mxu1 %v658_v3  ;;  %v734_v2 = vld [vmem:[#allocation4 + $0x4c0] sm:$0xff]  ;;  %v860_v3 = vld [vmem:[#allocation4 + $0x8b0] sm:$0xff] }
 0x2de   :  { %1161 = vmatpush1.msra.mxu0 %v792_v4  ;;  %1202 = vmatprep.mubr.f32.mxu0 %v645_v17  ;;  %v647_v17 = vld [vmem:[#allocation4 + $0x208] sm:$0xff] }
 0x2df   :  { %1162 = vmatprep.subr.mxu0 %v789_v5  ;;  %951 = vmatprep.subr.mxu1 %v655_v9  ;;  %v731_v4 = vld [vmem:[#allocation4 + $0x4a8] sm:$0xff]  ;;  %v857_v5 = vld [vmem:[#allocation4 + $0x898] sm:$0xff] }
 0x2e0   :  { %1163 = vmatpush1.msra.mxu0 %v788_v6  ;;  %952 = vmatpush1.msra.mxu1 %v654_v12  ;;  %v730_v6 = vld [vmem:[#allocation4 + $0x4a0] sm:$0xff]  ;;  %v853_v9 = vld [vmem:[#allocation4 + $0x878] sm:$0xff]  ;;  %v852_v12 = vld [vmem:[#allocation4 + $0x870] sm:$0xff] }
 0x2e1   :  { %1164 = vmatprep.subr.mxu0 %v785_v7  ;;  %953 = vmatprep.subr.mxu1 %v651_v16  ;;  %v856_v7 = vld [vmem:[#allocation4 + $0x890] sm:$0xff]  ;;  %v849_v16 = vld [vmem:[#allocation4 + $0x858] sm:$0xff] }
 0x2e2   :  { %1165 = vmatpush1.msra.mxu0 %v784_v8  ;;  %954 = vmatpush1.msra.mxu1 %v650_v19  ;;  %v727_v8 = vld [vmem:[#allocation4 + $0x488] sm:$0xff]  ;;  %v848_v19 = vld [vmem:[#allocation4 + $0x850] sm:$0xff] }
 0x2e3   :  { %1166 = vmatprep.subr.mxu0 %v781_v11  ;;  %955 = vmatprep.subr.mxu1 %v647_v17  ;;  %v726_v11 = vld [vmem:[#allocation4 + $0x480] sm:$0xff]  ;;  %v845_v17 = vld [vmem:[#allocation4 + $0x838] sm:$0xff] }
 0x2e4   :  { %1167 = vmatpush1.msra.mxu0 %v780_v14  ;;  %956 = vmatpush1.msra.mxu1 %v646_v21  ;;  %v723_v14 = vld [vmem:[#allocation4 + $0x468] sm:$0xff]  ;;  %v844_v21 = vld [vmem:[#allocation4 + $0x830] sm:$0xff] }
 0x2e5   :  { %1168 = vmatprep.subr.mxu0 %v777_v18  ;;  %957 = vmatprep.subr.mxu1 %v771_v23  ;;  %v722_v18 = vld [vmem:[#allocation4 + $0x460] sm:$0xff]  ;;  %v841_v23 = vld [vmem:[#allocation4 + $0x818] sm:$0xff] }
 0x2e6   :  { %1169 = vmatpush1.msra.mxu0 %v776_v13  ;;  %958 = vmatpush2.msra.mxu1 %v770_v30  ;;  %v719_v13 = vld [vmem:[#allocation4 + $0x448] sm:$0xff]  ;;  %v840_v30 = vld [vmem:[#allocation4 + $0x810] sm:$0xff] }
 0x2e7   :  { %1170 = vmatprep.subr.mxu0 %v901_v20  ;;  %959 = vmatprep.subr.mxu1 %v767_v26  ;;  %v718_v20 = vld [vmem:[#allocation4 + $0x440] sm:$0xff] }
 0x2e8   :  { %1171 = vmatpush2.msra.mxu0 %v900_v22  ;;  %960 = vmatpush2.msra.mxu1 %v766_v28  ;;  %v715_v22 = vld [vmem:[#allocation4 + $0x428] sm:$0xff]  ;;  %v710_v26 = vld [vmem:[#allocation4 + $0x400] sm:$0xff] }
 0x2e9   :  { %1172 = vmatprep.subr.mxu0 %v897_v24  ;;  %961 = vmatprep.subr.mxu1 %v763_v31  ;;  %v714_v24 = vld [vmem:[#allocation4 + $0x420] sm:$0xff]  ;;  %v482_v31 = vsub.s32 0, %v1871_v54 }
 0x2ea   :  { %1173 = vmatpush2.msra.mxu0 %v896_v25  ;;  %962 = vmatpush2.msra.mxu1 %v762_v33  ;;  %v711_v25 = vld [vmem:[#allocation4 + $0x408] sm:$0xff] }
 0x2eb   :  { %1174 = vmatprep.subr.mxu0 %v893_v27  ;;  %963 = vmatprep.subr.mxu1 %v759_v35  ;;  %v709_v27 = vld [vmem:[#allocation4 + $0x3f8] sm:$0xff]  ;;  %v483_v33 = vrot.slane %v1874_v61, %v482_v31 }
 0x2ec   :  { %1175 = vmatpush2.msra.mxu0 %v892_v29  ;;  %964 = vmatpush2.msra.mxu1 %v758_v37 }
 0x2ed   :  { %1176 = vmatprep.subr.mxu0 %v889_v32  ;;  %965 = vmatprep.subr.mxu1 %v755_v39  ;;  %v486_v32 = vsub.s32 1, %v1871_v54  ;;  %v708_v39 = vld [vmem:[#allocation4 + $0x3f0] sm:$0xff] }
 0x2ee   :  { %1177 = vmatpush2.msra.mxu0 %v888_v34  ;;  %966 = vmatpush2.msra.mxu1 %v754_v41  ;;  %v704_v41 = vld [vmem:[#allocation4 + $0x3d0] sm:$0xff] }
 0x2ef   :  { %1178 = vmatprep.subr.mxu0 %v885_v36  ;;  %967 = vmatprep.subr.mxu1 %v751_v43  ;;  %v487_v10 = vrot.slane %v1874_v61, %v486_v32  ;;  %v700_v61 = vld [vmem:[#allocation4 + $0x3b0] sm:$0xff]  ;;  %v697_v43 = vld [vmem:[#allocation4 + $0x398] sm:$0xff] }
 0x2f0   :  { %1179 = vmatpush2.msra.mxu0 %v884_v38  ;;  %968 = vmatpush2.msra.mxu1 %v750_v45  ;;  %v693_v45 = vld [vmem:[#allocation4 + $0x378] sm:$0xff] }
 0x2f1   :  { %1180 = vmatprep.subr.mxu0 %v881_v40  ;;  %969 = vmatprep.subr.mxu1 %v747_v47  ;;  %v705_v40 = vld [vmem:[#allocation4 + $0x3d8] sm:$0xff] }
 0x2f2   :  { %1181 = vmatpush2.msra.mxu0 %v880_v42  ;;  %970 = vmatpush2.msra.mxu1 %v746_v48  ;;  %v701_v42 = vld [vmem:[#allocation4 + $0x3b8] sm:$0xff] }
 0x2f3   :  { %1182 = vmatprep.subr.mxu0 %v877_v44  ;;  %971 = vmatprep.subr.mxu1 %v743_v51  ;;  %v696_v44 = vld [vmem:[#allocation4 + $0x390] sm:$0xff]  ;;  %v689_v47 = vld [vmem:[#allocation4 + $0x358] sm:$0xff] }
 0x2f4   :  { %1183 = vmatpush2.msra.mxu0 %v876_v46  ;;  %972 = vmatpush2.msra.mxu1 %v742_v53  ;;  %v692_v46 = vld [vmem:[#allocation4 + $0x370] sm:$0xff]  ;;  %v685_v48 = vld [vmem:[#allocation4 + $0x338] sm:$0xff] }
 0x2f5   :  { %1184 = vmatprep.subr.mxu0 %v873_v0  ;;  %973 = vmatprep.subr.mxu1 %v739_v56  ;;  %v688_v0 = vld [vmem:[#allocation4 + $0x350] sm:$0xff]  ;;  %v681_v51 = vld [vmem:[#allocation4 + $0x318] sm:$0xff] }
 0x2f6   :  { %1185 = vmatpush2.msra.mxu0 %v872_v50  ;;  %974 = vmatpush2.msra.mxu1 %v738_v58  ;;  %v684_v50 = vld [vmem:[#allocation4 + $0x330] sm:$0xff]  ;;  %v677_v53 = vld [vmem:[#allocation4 + $0x2f8] sm:$0xff] }
 0x2f7   :  { %1186 = vmatprep.subr.mxu0 %v869_v52  ;;  %975 = vmatprep.subr.mxu1 %v735_v62  ;;  %v680_v52 = vld [vmem:[#allocation4 + $0x310] sm:$0xff]  ;;  %v673_v56 = vld [vmem:[#allocation4 + $0x2d8] sm:$0xff] }
 0x2f8   :  { %1187 = vmatpush2.msra.mxu0 %v868_v55  ;;  %976 = vmatpush2.msra.mxu1 %v734_v2  ;;  %v676_v55 = vld [vmem:[#allocation4 + $0x2f0] sm:$0xff]  ;;  %v669_v58 = vld [vmem:[#allocation4 + $0x2b8] sm:$0xff] }
 0x2f9   :  { %1188 = vmatprep.subr.mxu0 %v865_v57  ;;  %977 = vmatprep.subr.mxu1 %v731_v4  ;;  %v672_v57 = vld [vmem:[#allocation4 + $0x2d0] sm:$0xff]  ;;  %v665_v62 = vld [vmem:[#allocation4 + $0x298] sm:$0xff] }
 0x2fa   :  { %1189 = vmatpush2.msra.mxu0 %v864_v60  ;;  %978 = vmatpush2.msra.mxu1 %v730_v6  ;;  %v668_v60 = vld [vmem:[#allocation4 + $0x2b0] sm:$0xff]  ;;  %v661_v2 = vld [vmem:[#allocation4 + $0x278] sm:$0xff] }
 0x2fb   :  { %1190 = vmatprep.subr.mxu0 %v861_v1  ;;  %979 = vmatprep.subr.mxu1 %v727_v8  ;;  %v664_v1 = vld [vmem:[#allocation4 + $0x290] sm:$0xff]  ;;  %v657_v4 = vld [vmem:[#allocation4 + $0x258] sm:$0xff] }
 0x2fc   :  { %1191 = vmatpush2.msra.mxu0 %v860_v3  ;;  %980 = vmatpush2.msra.mxu1 %v726_v11  ;;  %v660_v3 = vld [vmem:[#allocation4 + $0x270] sm:$0xff]  ;;  %v653_v6 = vld [vmem:[#allocation4 + $0x238] sm:$0xff] }
 0x2fd   :  { %1192 = vmatprep.subr.mxu0 %v857_v5  ;;  %981 = vmatprep.subr.mxu1 %v723_v14  ;;  %v656_v5 = vld [vmem:[#allocation4 + $0x250] sm:$0xff]  ;;  %v649_v8 = vld [vmem:[#allocation4 + $0x218] sm:$0xff] }
 0x2fe   :  { %1193 = vmatpush2.msra.mxu0 %v856_v7  ;;  %982 = vmatpush2.msra.mxu1 %v722_v18  ;;  %v652_v7 = vld [vmem:[#allocation4 + $0x230] sm:$0xff]  ;;  %v773_v11 = vld [vmem:[#allocation4 + $0x5f8] sm:$0xff] }
 0x2ff   :  { %1194 = vmatprep.subr.mxu0 %v853_v9  ;;  %983 = vmatprep.subr.mxu1 %v719_v13  ;;  %v648_v9 = vld [vmem:[#allocation4 + $0x210] sm:$0xff]  ;;  %v769_v14 = vld [vmem:[#allocation4 + $0x5d8] sm:$0xff] }
 0x300   :  { %1195 = vmatpush2.msra.mxu0 %v852_v12  ;;  %984 = vmatpush2.msra.mxu1 %v718_v20  ;;  %v772_v12 = vld [vmem:[#allocation4 + $0x5f0] sm:$0xff]  ;;  %v765_v18 = vld [vmem:[#allocation4 + $0x5b8] sm:$0xff] }
 0x301   :  { %1196 = vmatprep.subr.mxu0 %v849_v16  ;;  %985 = vmatprep.subr.mxu1 %v715_v22  ;;  %v768_v16 = vld [vmem:[#allocation4 + $0x5d0] sm:$0xff]  ;;  %v761_v13 = vld [vmem:[#allocation4 + $0x598] sm:$0xff] }
 0x302   :  { %1197 = vmatpush2.msra.mxu0 %v848_v19  ;;  %986 = vmatpush2.msra.mxu1 %v714_v24  ;;  %v764_v19 = vld [vmem:[#allocation4 + $0x5b0] sm:$0xff]  ;;  %v757_v20 = vld [vmem:[#allocation4 + $0x578] sm:$0xff] }
 0x303   :  { %1198 = vmatprep.subr.mxu0 %v845_v17  ;;  %987 = vmatprep.subr.mxu1 %v711_v25  ;;  %v760_v17 = vld [vmem:[#allocation4 + $0x590] sm:$0xff]  ;;  %v753_v22 = vld [vmem:[#allocation4 + $0x558] sm:$0xff] }
 0x304   :  { %1199 = vmatpush2.msra.mxu0 %v844_v21  ;;  %988 = vmatpush2.msra.mxu1 %v710_v26  ;;  %v756_v21 = vld [vmem:[#allocation4 + $0x570] sm:$0xff]  ;;  %v749_v24 = vld [vmem:[#allocation4 + $0x538] sm:$0xff] }
 0x305   :  { %1200 = vmatprep.subr.mxu0 %v841_v23  ;;  %1067 = vmatprep.subr.mxu1 %v709_v27  ;;  %v752_v23 = vld [vmem:[#allocation4 + $0x550] sm:$0xff]  ;;  %v745_v25 = vld [vmem:[#allocation4 + $0x518] sm:$0xff] }
 0x306   :  { %1201 = vmatpush2.msra.mxu0 %v840_v30  ;;  %v748_v30 = vld [vmem:[#allocation4 + $0x530] sm:$0xff]  ;;  %v741_v27 = vld [vmem:[#allocation4 + $0x4f8] sm:$0xff] }
 0x307   :  { %1203 = vmatmul.mubr.f32.vlgmr.msra.gmra.mxu0 %v644_v15  ;;  %v744_v26 = vld [vmem:[#allocation4 + $0x510] sm:$0xff] }
 0x364   :  { %v1898_v28 = vpop.f32.mrf.mxu1 }
 0x366   :  { %v1656_v29 = vpop.f32.mrf.mxu1 }
 0x367   :  { %v740_v29 = vld [vmem:[#allocation4 + $0x4f0] sm:$0xff] }
 0x384   :  { %v566_v15 = vpop.f32.mrf.mxu1 }
 0x385   :  { %v1908_v34 = vadd.f32 %v566_v15, %v483_v33  ;;  %v737_v33 = vld [vmem:[#allocation4 + $0x4d8] sm:$0xff] }
 0x386   :  { %v568_v35 = vpop.f32.mrf.mxu1  ;;  %v733_v15 = vld [vmem:[#allocation4 + $0x4b8] sm:$0xff] }
 0x387   :  { %v569_v36 = vadd.f32 %v568_v35, %v487_v10  ;;  %v642_v38 = vmax.f32 %v1908_v34, 0.0  ;;  %v736_v10 = vld [vmem:[#allocation4 + $0x4d0] sm:$0xff]  ;;  %v1238_v34 = vld [vmem:[#allocation6 + $0xc8] sm:$0xff] }
 0x388   :  { %v732_v35 = vld [vmem:[#allocation4 + $0x4b0] sm:$0xff] }
 0x389   :  { %v643_v37 = vmax.f32 %v569_v36, 0.0  ;;  %v729_v36 = vld [vmem:[#allocation4 + $0x498] sm:$0xff] }
 0x38b   :  { %989 = vmatprep.mubr.f32.mxu1 %v643_v37 }
 0x38c   :  { %990 = vmatmul.mubr.f32.vlgmr.msra.gmra.mxu1 %v642_v38 }
 0x38d   :  { %1068 = vmatpush1.msra.mxu1 %v708_v39  ;;  %1131 = vmatprep.mubr.f32.mxu1 %v643_v37  ;;  %v728_v37 = vld [vmem:[#allocation4 + $0x490] sm:$0xff]  ;;  %v725_v39 = vld [vmem:[#allocation4 + $0x478] sm:$0xff] }
 0x38e   :  { %1069 = vmatprep.subr.mxu1 %v705_v40  ;;  %v724_v40 = vld [vmem:[#allocation4 + $0x470] sm:$0xff] }
 0x38f   :  { %1070 = vmatpush1.msra.mxu1 %v704_v41  ;;  %v721_v41 = vld [vmem:[#allocation4 + $0x458] sm:$0xff] }
 0x390   :  { %1071 = vmatprep.subr.mxu1 %v701_v42  ;;  %v720_v42 = vld [vmem:[#allocation4 + $0x450] sm:$0xff] }
 0x391   :  { %1072 = vmatpush1.msra.mxu1 %v700_v61  ;;  %v717_v61 = vld [vmem:[#allocation4 + $0x438] sm:$0xff] }
 0x392   :  { %1073 = vmatprep.subr.mxu1 %v697_v43  ;;  %v716_v43 = vld [vmem:[#allocation4 + $0x430] sm:$0xff] }
 0x393   :  { %1074 = vmatpush1.msra.mxu1 %v696_v44  ;;  %v713_v44 = vld [vmem:[#allocation4 + $0x418] sm:$0xff] }
 0x394   :  { %1075 = vmatprep.subr.mxu1 %v693_v45  ;;  %v712_v45 = vld [vmem:[#allocation4 + $0x410] sm:$0xff] }
 0x395   :  { %1076 = vmatpush1.msra.mxu1 %v692_v46  ;;  %v1244_v46 = vld [vmem:[#allocation6 + $0xf8] sm:$0xff] }
 0x396   :  { %1077 = vmatprep.subr.mxu1 %v689_v47  ;;  %v1228_v47 = vld [vmem:[#allocation6 + $0x78] sm:$0xff] }
 0x397   :  { %1078 = vmatpush1.msra.mxu1 %v688_v0  ;;  %v1243_v0 = vld [vmem:[#allocation6 + $0xf0] sm:$0xff] }
 0x398   :  { %1079 = vmatprep.subr.mxu1 %v685_v48  ;;  %v1227_v48 = vld [vmem:[#allocation6 + $0x70] sm:$0xff] }
 0x399   :  { %1080 = vmatpush1.msra.mxu1 %v684_v50  ;;  %v1242_v50 = vld [vmem:[#allocation6 + $0xe8] sm:$0xff] }
 0x39a   :  { %1081 = vmatprep.subr.mxu1 %v681_v51  ;;  %v1226_v51 = vld [vmem:[#allocation6 + $0x68] sm:$0xff] }
 0x39b   :  { %1082 = vmatpush1.msra.mxu1 %v680_v52  ;;  %v1241_v52 = vld [vmem:[#allocation6 + $0xe0] sm:$0xff] }
 0x39c   :  { %1083 = vmatprep.subr.mxu1 %v677_v53  ;;  %v1225_v53 = vld [vmem:[#allocation6 + $0x60] sm:$0xff] }
 0x39d   :  { %1084 = vmatpush1.msra.mxu1 %v676_v55  ;;  %v1240_v55 = vld [vmem:[#allocation6 + $0xd8] sm:$0xff] }
 0x39e   :  { %1085 = vmatprep.subr.mxu1 %v673_v56  ;;  %v1224_v56 = vld [vmem:[#allocation6 + $0x58] sm:$0xff] }
 0x39f   :  { %1086 = vmatpush1.msra.mxu1 %v672_v57  ;;  %v1239_v57 = vld [vmem:[#allocation6 + $0xd0] sm:$0xff] }
 0x3a0   :  { %1087 = vmatprep.subr.mxu1 %v669_v58  ;;  %v1223_v58 = vld [vmem:[#allocation6 + $0x50] sm:$0xff] }
 0x3a1   :  { %1088 = vmatpush1.msra.mxu1 %v668_v60  ;;  %v1276_v60 = vld [vmem:[#allocation6 + $0x1f8] sm:$0xff] }
 0x3a2   :  { %1089 = vmatprep.subr.mxu1 %v665_v62  ;;  %v1260_v62 = vld [vmem:[#allocation6 + $0x178] sm:$0xff]  ;;  %1522 = vmatprep.subr.mxu0 %v1276_v60 }
 0x3a3   :  { %1090 = vmatpush1.msra.mxu1 %v664_v1  ;;  %v1275_v1 = vld [vmem:[#allocation6 + $0x1f0] sm:$0xff]  ;;  %1523 = vmatpush3.msra.mxu0 %v1260_v62 }
 0x3a4   :  { %1091 = vmatprep.subr.mxu1 %v661_v2  ;;  %v1237_v2 = vld [vmem:[#allocation6 + $0xc0] sm:$0xff]  ;;  %1524 = vmatprep.subr.mxu0 %v1275_v1 }
 0x3a5   :  { %1092 = vmatpush1.msra.mxu1 %v660_v3  ;;  %v1259_v3 = vld [vmem:[#allocation6 + $0x170] sm:$0xff] }
 0x3a6   :  { %1093 = vmatprep.subr.mxu1 %v657_v4  ;;  %v1221_v4 = vld [vmem:[#allocation6 + $0x40] sm:$0xff]  ;;  %1525 = vmatpush3.msra.mxu0 %v1259_v3 }
 0x3a7   :  { %1094 = vmatpush1.msra.mxu1 %v656_v5  ;;  %v1274_v5 = vld [vmem:[#allocation6 + $0x1e8] sm:$0xff] }
 0x3a8   :  { %1095 = vmatprep.subr.mxu1 %v653_v6  ;;  %v1236_v6 = vld [vmem:[#allocation6 + $0xb8] sm:$0xff]  ;;  %1526 = vmatprep.subr.mxu0 %v1274_v5 }
 0x3a9   :  { %1096 = vmatpush1.msra.mxu1 %v652_v7  ;;  %v1258_v7 = vld [vmem:[#allocation6 + $0x168] sm:$0xff] }
 0x3aa   :  { %1097 = vmatprep.subr.mxu1 %v649_v8  ;;  %v1220_v8 = vld [vmem:[#allocation6 + $0x38] sm:$0xff]  ;;  %1527 = vmatpush3.msra.mxu0 %v1258_v7 }
 0x3ab   :  { %1098 = vmatpush1.msra.mxu1 %v648_v9  ;;  %v1273_v9 = vld [vmem:[#allocation6 + $0x1e0] sm:$0xff] }
 0x3ac   :  { %1099 = vmatprep.subr.mxu1 %v773_v11  ;;  %v1235_v11 = vld [vmem:[#allocation6 + $0xb0] sm:$0xff]  ;;  %1528 = vmatprep.subr.mxu0 %v1273_v9 }
 0x3ad   :  { %1100 = vmatpush2.msra.mxu1 %v772_v12  ;;  %v1257_v12 = vld [vmem:[#allocation6 + $0x160] sm:$0xff] }
 0x3ae   :  { %1101 = vmatprep.subr.mxu1 %v769_v14  ;;  %v1219_v14 = vld [vmem:[#allocation6 + $0x30] sm:$0xff]  ;;  %1529 = vmatpush3.msra.mxu0 %v1257_v12 }
 0x3af   :  { %1102 = vmatpush2.msra.mxu1 %v768_v16  ;;  %v1272_v16 = vld [vmem:[#allocation6 + $0x1d8] sm:$0xff] }
 0x3b0   :  { %1103 = vmatprep.subr.mxu1 %v765_v18  ;;  %v1234_v18 = vld [vmem:[#allocation6 + $0xa8] sm:$0xff]  ;;  %1530 = vmatprep.subr.mxu0 %v1272_v16 }
 0x3b1   :  { %1104 = vmatpush2.msra.mxu1 %v764_v19  ;;  %v1256_v19 = vld [vmem:[#allocation6 + $0x158] sm:$0xff] }
 0x3b2   :  { %1105 = vmatprep.subr.mxu1 %v761_v13  ;;  %v1218_v13 = vld [vmem:[#allocation6 + $0x28] sm:$0xff]  ;;  %1531 = vmatpush3.msra.mxu0 %v1256_v19  ;;  %v338_v19 = vld [vmem:[#allocation7 + $0x3] ss:$0 sm:$0xff] }
 0x3b3   :  { %1106 = vmatpush2.msra.mxu1 %v760_v17  ;;  %v1271_v17 = vld [vmem:[#allocation6 + $0x1d0] sm:$0xff] }
 0x3b4   :  { %1107 = vmatprep.subr.mxu1 %v757_v20  ;;  %v1233_v20 = vld [vmem:[#allocation6 + $0xa0] sm:$0xff]  ;;  %1532 = vmatprep.subr.mxu0 %v1271_v17 }
 0x3b5   :  { %1108 = vmatpush2.msra.mxu1 %v756_v21  ;;  %v1255_v21 = vld [vmem:[#allocation6 + $0x150] sm:$0xff] }
 0x3b6   :  { %1109 = vmatprep.subr.mxu1 %v753_v22  ;;  %v1217_v22 = vld [vmem:[#allocation6 + $0x20] sm:$0xff]  ;;  %1533 = vmatpush3.msra.mxu0 %v1255_v21 }
 0x3b7   :  { %1110 = vmatpush2.msra.mxu1 %v752_v23  ;;  %v1270_v23 = vld [vmem:[#allocation6 + $0x1c8] sm:$0xff] }
 0x3b8   :  { %1111 = vmatprep.subr.mxu1 %v749_v24  ;;  %v1232_v24 = vld [vmem:[#allocation6 + $0x98] sm:$0xff]  ;;  %1534 = vmatprep.subr.mxu0 %v1270_v23 }
 0x3b9   :  { %1112 = vmatpush2.msra.mxu1 %v748_v30  ;;  %v1254_v30 = vld [vmem:[#allocation6 + $0x148] sm:$0xff] }
 0x3ba   :  { %1113 = vmatprep.subr.mxu1 %v745_v25  ;;  %v1216_v25 = vld [vmem:[#allocation6 + $0x18] sm:$0xff]  ;;  %1535 = vmatpush3.msra.mxu0 %v1254_v30 }
 0x3bb   :  { %1114 = vmatpush2.msra.mxu1 %v744_v26  ;;  %v1269_v26 = vld [vmem:[#allocation6 + $0x1c0] sm:$0xff] }
 0x3bc   :  { %1115 = vmatprep.subr.mxu1 %v741_v27  ;;  %v1231_v27 = vld [vmem:[#allocation6 + $0x90] sm:$0xff]  ;;  %1536 = vmatprep.subr.mxu0 %v1269_v26 }
 0x3bd   :  { %1116 = vmatpush2.msra.mxu1 %v740_v29  ;;  %v1253_v29 = vld [vmem:[#allocation6 + $0x140] sm:$0xff] }
 0x3be   :  { %1117 = vmatprep.subr.mxu1 %v737_v33  ;;  %v1215_v33 = vld [vmem:[#allocation6 + $0x10] sm:$0xff]  ;;  %1537 = vmatpush3.msra.mxu0 %v1253_v29 }
 0x3bf   :  { %1118 = vmatpush2.msra.mxu1 %v736_v10  ;;  %v1268_v10 = vld [vmem:[#allocation6 + $0x1b8] sm:$0xff] }
 0x3c0   :  { %1119 = vmatprep.subr.mxu1 %v733_v15  ;;  %v1230_v15 = vld [vmem:[#allocation6 + $0x88] sm:$0xff]  ;;  %1538 = vmatprep.subr.mxu0 %v1268_v10 }
 0x3c1   :  { %1120 = vmatpush2.msra.mxu1 %v732_v35  ;;  %v1252_v35 = vld [vmem:[#allocation6 + $0x138] sm:$0xff] }
 0x3c2   :  { %1121 = vmatprep.subr.mxu1 %v729_v36  ;;  %v1214_v36 = vld [vmem:[#allocation6 + $0x8] sm:$0xff]  ;;  %1539 = vmatpush3.msra.mxu0 %v1252_v35 }
 0x3c3   :  { %1122 = vmatpush2.msra.mxu1 %v728_v37  ;;  %v1267_v37 = vld [vmem:[#allocation6 + $0x1b0] sm:$0xff] }
 0x3c4   :  { %1123 = vmatprep.subr.mxu1 %v725_v39  ;;  %v1229_v39 = vld [vmem:[#allocation6 + $0x80] sm:$0xff]  ;;  %1540 = vmatprep.subr.mxu0 %v1267_v37 }
 0x3c5   :  { %1124 = vmatpush2.msra.mxu1 %v724_v40  ;;  %v1251_v40 = vld [vmem:[#allocation6 + $0x130] sm:$0xff] }
 0x3c6   :  { %1125 = vmatprep.subr.mxu1 %v721_v41  ;;  %v1213_v41 = vld [vmem:[#allocation6] sm:$0xff]  ;;  %1541 = vmatpush3.msra.mxu0 %v1251_v40 }
 0x3c7   :  { %1126 = vmatpush2.msra.mxu1 %v720_v42  ;;  %v1266_v42 = vld [vmem:[#allocation6 + $0x1a8] sm:$0xff] }
 0x3c8   :  { %1127 = vmatprep.subr.mxu1 %v717_v61  ;;  %v1250_v61 = vld [vmem:[#allocation6 + $0x128] sm:$0xff]  ;;  %1542 = vmatprep.subr.mxu0 %v1266_v42 }
 0x3c9   :  { %1128 = vmatpush2.msra.mxu1 %v716_v43  ;;  %1543 = vmatpush3.msra.mxu0 %v1250_v61  ;;  %v1265_v43 = vld [vmem:[#allocation6 + $0x1a0] sm:$0xff] }
 0x3ca   :  { %1129 = vmatprep.subr.mxu1 %v713_v44  ;;  %1544 = vmatprep.subr.mxu0 %v1265_v43  ;;  %v1249_v44 = vld [vmem:[#allocation6 + $0x120] sm:$0xff] }
 0x3cb   :  { %1130 = vmatpush2.msra.mxu1 %v712_v45  ;;  %1545 = vmatpush3.msra.mxu0 %v1249_v44  ;;  %v1264_v45 = vld [vmem:[#allocation6 + $0x198] sm:$0xff] }
 0x3cc   :  { %1132 = vmatmul.mubr.f32.vlgmr.msra.gmra.mxu1 %v642_v38  ;;  %1487 = vmatprep.subr.mxu1 %v1244_v46  ;;  %v1222_v38 = vld [vmem:[#allocation6 + $0x48] sm:$0xff]  ;;  %v1248_v46 = vld [vmem:[#allocation6 + $0x118] sm:$0xff] }
 0x3cd   :  { %1488 = vmatpush3.msra.mxu1 %v1228_v47  ;;  %1546 = vmatprep.subr.mxu0 %v1264_v45  ;;  %v1263_v47 = vld [vmem:[#allocation6 + $0x190] sm:$0xff] }
 0x3ce   :  { %1489 = vmatprep.subr.mxu1 %v1243_v0  ;;  %1547 = vmatpush3.msra.mxu0 %v1248_v46  ;;  %v1247_v0 = vld [vmem:[#allocation6 + $0x110] sm:$0xff] }
 0x3cf   :  { %1490 = vmatpush3.msra.mxu1 %v1227_v48  ;;  %1548 = vmatprep.subr.mxu0 %v1263_v47  ;;  %v1262_v48 = vld [vmem:[#allocation6 + $0x188] sm:$0xff] }
 0x3d0   :  { %1491 = vmatprep.subr.mxu1 %v1242_v50  ;;  %1549 = vmatpush3.msra.mxu0 %v1247_v0  ;;  %v1246_v50 = vld [vmem:[#allocation6 + $0x108] sm:$0xff] }
 0x3d1   :  { %1492 = vmatpush3.msra.mxu1 %v1226_v51  ;;  %1550 = vmatprep.subr.mxu0 %v1262_v48  ;;  %v1261_v51 = vld [vmem:[#allocation6 + $0x180] sm:$0xff] }
 0x3d2   :  { %1493 = vmatprep.subr.mxu1 %v1241_v52  ;;  %1551 = vmatpush3.msra.mxu0 %v1246_v50  ;;  %v1245_v52 = vld [vmem:[#allocation6 + $0x100] sm:$0xff] }
 0x3d3   :  { %1494 = vmatpush3.msra.mxu1 %v1225_v53  ;;  %1552 = vmatprep.subr.mxu0 %v1261_v51  ;;  %v903_v53 = vld [vmem:[#allocation7 + $0x5] ss:$8 sm:$0xf] }
 0x3d4   :  { %1495 = vmatprep.subr.mxu1 %v1240_v55  ;;  %1553 = vmatpush3.msra.mxu0 %v1245_v52  ;;  %v908_v55 = vrot.slane %v903_v53, %v482_v31  ;;  %v916_v5 = vrot.slane %v903_v53, %v490_v59  ;;  %v920_v31 = vrot.slane %v903_v53, %v494_v63 }
 0x3d5   :  { %1496 = vmatpush3.msra.mxu1 %v1224_v56  ;;  %v912_v56 = vrot.slane %v903_v53, %v486_v32 }
 0x3d6   :  { %1497 = vmatprep.subr.mxu1 %v1239_v57  ;;  %v1062_v57 = vpop.f32.mrf.mxu0 }
 0x3d7   :  { %1498 = vmatpush3.msra.mxu1 %v1223_v58 }
 0x3d8   :  { %1499 = vmatprep.subr.mxu1 %v1238_v34  ;;  %v1064_v62 = vpop.f32.mrf.mxu0 }
 0x3d9   :  { %1500 = vmatpush3.msra.mxu1 %v1222_v38 }
 0x3da   :  { %1501 = vmatprep.subr.mxu1 %v1237_v2 }
 0x3db   :  { %1502 = vmatpush3.msra.mxu1 %v1221_v4 }
 0x3dc   :  { %1503 = vmatprep.subr.mxu1 %v1236_v6  ;;  %v1204_v6 = vpop.f32.mrf.mxu0 }
 0x3dd   :  { %1504 = vmatpush3.msra.mxu1 %v1220_v8 }
 0x3de   :  { %1505 = vmatprep.subr.mxu1 %v1235_v11  ;;  %v1206_v11 = vpop.f32.mrf.mxu0 }
 0x3df   :  { %1506 = vmatpush3.msra.mxu1 %v1219_v14 }
 0x3e0   :  { %1507 = vmatprep.subr.mxu1 %v1234_v18 }
 0x3e1   :  { %1508 = vmatpush3.msra.mxu1 %v1218_v13  ;;  %v410_v13 = vadd.f32 %v1898_v28, %v338_v19 }
 0x3e2   :  { %1509 = vmatprep.subr.mxu1 %v1233_v20 }
 0x3e3   :  { %1510 = vmatpush3.msra.mxu1 %v1217_v22  ;;  %v1438_v17 = vmul.f32 -1.442695, %v410_v13  ;;  %v1277_v22 = vld [vmem:[#allocation7 + $0x6] ss:$0 sm:$0xff] }
 0x3e4   :  { %1511 = vmatprep.subr.mxu1 %v1232_v24  ;;  %v1419_v24 = vand.u32 127, %v480_v49 }
 0x3e5   :  { %1512 = vmatpush3.msra.mxu1 %v1216_v25  ;;  %1667 = vpow2.f32 %v1438_v17 }
 0x3e6   :  { %1513 = vmatprep.subr.mxu1 %v1231_v27  ;;  %vm1420_vm3 = vcmp.lt.s32.totalorder %v1419_v24, 4 }
 0x3e7   :  { %1514 = vmatpush3.msra.mxu1 %v1215_v33 }
 0x3e8   :  { %1515 = vmatprep.subr.mxu1 %v1230_v15 }
 0x3e9   :  { %1516 = vmatpush3.msra.mxu1 %v1214_v36 }
 0x3ea   :  { %1517 = vmatprep.subr.mxu1 %v1229_v39 }
 0x3eb   :  { %1518 = vmatpush3.msra.mxu1 %v1213_v41 }
 0x3f2   :  { %v1668_v59 = vpop.eup %1667 }
 0x3f3   :  { %v1424_v54 = vadd.f32 1.0, %v1668_v59 }
 0x3f5   :  { %1669 = vrcp.f32 %v1424_v54 }
 0x402   :  { %v1670_v29 = vpop.eup %1669 }
 0x44c   :  { %v991_v58 = vpop.f32.mrf.mxu1 }
 0x44d   :  { %v992_v34 = vadd.f32 %v991_v58, %v908_v55 }
 0x44e   :  { %v993_v38 = vpop.f32.mrf.mxu1 }
 0x44f   :  { %v994_v60 = vadd.f32 %v993_v38, %v912_v56  ;;  %v1063_v1 = vadd.f32 %v1062_v57, %v992_v34 }
 0x451   :  { %v1065_v2 = vadd.f32 %v1064_v62, %v994_v60  ;;  %v1209_v4 = vmax.f32 %v1063_v1, 0.0 }
 0x453   :  { %v1210_v3 = vmax.f32 %v1065_v2, 0.0 }
 0x455   :  { %1342 = vmatprep.mubr.f32.mxu1 %v1210_v3 }
 0x456   :  { %1343 = vmatmul.mubr.f32.vlgmr.msra.gmra.mxu1 %v1209_v4 }
 0x48c   :  { %v1133_v32 = vpop.f32.mrf.mxu1 }
 0x48d   :  { %v1134_v7 = vadd.f32 %v1133_v32, %v916_v5 }
 0x48e   :  { %v1135_v8 = vpop.f32.mrf.mxu1 }
 0x48f   :  { %v1136_v9 = vadd.f32 %v1135_v8, %v920_v31  ;;  %v1205_v12 = vadd.f32 %v1204_v6, %v1134_v7 }
 0x491   :  { %v1207_v14 = vadd.f32 %v1206_v11, %v1136_v9  ;;  %v1211_v18 = vmax.f32 %v1205_v12, 0.0 }
 0x493   :  { %v1212_v16 = vmax.f32 %v1207_v14, 0.0 }
 0x495   :  { %1412 = vmatprep.mubr.f32.mxu0 %v1212_v16 }
 0x496   :  { %1413 = vmatmul.mubr.f32.vlgmr.msra.gmra.mxu0 %v1211_v18 }
 0x516   :  { %v1519_v63 = vpop.f32.mrf.mxu1 }
 0x518   :  { %v1520_v20 = vpop.f32.mrf.mxu1 }
 0x519   :  { %v1521_v21 = vadd.f32 %v1520_v20, %v1519_v63 }
 0x51b   :  { %v1345_v25 = vadd.f32 %v1521_v21, %v1277_v22 }
 0x556   :  { %v1554_v23 = vpop.f32.mrf.mxu0 }
 0x558   :  { %v1555_v30 = vpop.f32.mrf.mxu0 }
 0x559   :  { %v1556_v26 = vadd.f32 %v1555_v30, %v1554_v23 }
 0x55b   :  { %v1415_v27 = vadd.f32 %v1556_v26, %v1345_v25 }
 0x55d   :  { %v1427_v33 = vsel %vm1420_vm3, %v1670_v29, %v1415_v27 }
 0x55e   :  { %1428 = vst [vmem:[%s1933_s5] sm:$0x3] %v1427_v33 }
 0x55f   :  { %1433 = vsyncpa [#allocation3], 1 }
 0x560   :  { %1434 = vsyncpa [#allocation5], 1 }
 0x561   :  { %1435 = vsyncpa [#allocation8], 1 }

</bundles_post_ra>
